<compile_context>
chip_gen: v6e
topology: v6e:2x2x1
jax: 0.10.0
libtpu: 0.0.40
codegen_flags: <defaults>
</compile_context>

<pallas_src>
import functools

import jax
import jax.numpy as jnp
import numpy as np
from jax.experimental import pallas as pl
from jax.experimental.pallas import tpu as pltpu


# ----------------------------- Pallas kernel ---------------------------------

def _tree_sum(vals):
    """Pairwise tree-sum: shorter VALU dependency chain than a serial accumulate."""
    while len(vals) > 1:
        nxt = [a + b for a, b in zip(vals[0::2], vals[1::2])]
        if len(vals) % 2:
            nxt.append(vals[-1])
        vals = nxt
    return vals[0]


def _sepconv_kernel(x_ref, dw1_ref, w1_ref, b1_ref, dw2_ref, w2t_ref, b2_ref,
                    o_ref, yp_ref, *, k, stride, pad, oh, ow, cin, cout, bsz):
    """Fused dw(s=stride) -> 1x1+BN+ReLU -> dw(s=1) -> 1x1+BN+ReLU for B images."""
    m = bsz * oh * ow

    # ---- stage 1: depthwise from pre-deinterleaved phase planes ----
    # Every tap is a contiguous, statically-offset slice (no strided VMEM views).
    dw1 = dw1_ref[...]                                   # (k*k, cin), hoisted once
    taps = []
    for i in range(k):
        for j in range(k):
            ph = (i % stride) * stride + (j % stride)
            r0, c0 = i // stride, j // stride
            tap = x_ref[:, ph, r0:r0 + oh, c0:c0 + ow, :].astype(jnp.float32)
            taps.append(tap * dw1[i * k + j])
    y1 = _tree_sum(taps)                                 # (bsz, oh, ow, cin)

    # 1x1 conv (BN scale pre-folded into w1) + shift + ReLU.
    z1 = jnp.dot(y1.reshape(m, cin), w1_ref[...],
                 preferred_element_type=jnp.float32)
    z1 = jnp.maximum(z1 + b1_ref[...], 0.0)              # (m, cin)

    # ---- stage 2: stride-1 depthwise over a VMEM-padded copy of z1 ----
    hp2, wp2 = oh + 2 * pad, ow + 2 * pad
    if pad > 0:
        # Zero only the halo strips; the interior is fully overwritten below.
        yp_ref[:, 0:pad, :, :] = jnp.zeros((bsz, pad, wp2, cin), jnp.float32)
        yp_ref[:, hp2 - pad:hp2, :, :] = jnp.zeros((bsz, pad, wp2, cin), jnp.float32)
        yp_ref[:, :, 0:pad, :] = jnp.zeros((bsz, hp2, pad, cin), jnp.float32)
        yp_ref[:, :, wp2 - pad:wp2, :] = jnp.zeros((bsz, hp2, pad, cin), jnp.float32)
    yp_ref[:, pad:pad + oh, pad:pad + ow, :] = z1.reshape(bsz, oh, ow, cin)

    dw2 = dw2_ref[...]                                   # (k*k, cin), hoisted once
    taps = []
    for i in range(k):
        for j in range(k):
            tap = yp_ref[:, i:i + oh, j:j + ow, :]
            taps.append(tap * dw2[i * k + j])
    y2 = _tree_sum(taps)                                 # (bsz, oh, ow, cin)

    # Transposed 1x1 (BN scale pre-folded into w2t) so the result -- and the HBM
    # store -- is lane-dense: (cout, m) with m a multiple of 128 at the chosen
    # batching.  Contraction dims (1,1) == matmul with transposed RHS on the MXU.
    z2t = jax.lax.dot_general(w2t_ref[...], y2.reshape(m, cin),
                              (((1,), (1,)), ((), ())),
                              preferred_element_type=jnp.float32)
    z2t = jnp.maximum(z2t + b2_ref[...], 0.0)            # (cout, m)
    o_ref[0] = z2t.astype(o_ref.dtype)


# ------------------------------ wrapper ---------------------------------------

def _pick_images_per_step(n, rows_per_image, target_rows=256, max_rows=4096):
    """Largest divisor of n with B*Ho*Wo <= max_rows, stopping once the MXU-friendly
    target row count is reached."""
    best = 1
    for b in range(1, n + 1):
        if n % b == 0 and b * rows_per_image <= max_rows:
            best = b
            if b * rows_per_image >= target_rows:
                break
    return best


def sep_conv_forward(x_nchw, params, stride=2, padding=1):
    """x_nchw: (N, Cin, H, W) -> (N, Cout, Ho, Wo); matches PyTorch SepConv.forward."""
    N, Cin, H, W = x_nchw.shape
    k = params["dw1"].shape[0]
    Cout = params["pw2"].shape[1]
    Ho = (H + 2 * padding - k) // stride + 1
    Wo = (W + 2 * padding - k) // stride + 1

    # ---- layout prep (pure permutations, done once in XLA) ----
    x = jnp.transpose(x_nchw, (0, 2, 3, 1))              # NCHW -> NHWC
    # Zero-pad, then deinterleave into stride x stride phase planes so each stride-s
    # depthwise tap becomes a contiguous static slice inside the kernel.
    Hh = -(-(H + 2 * padding) // stride)                 # ceil
    Wh = -(-(W + 2 * padding) // stride)
    xp = jnp.pad(x, ((0, 0),
                     (padding, Hh * stride - H - padding),
                     (padding, Wh * stride - W - padding),
                     (0, 0)))
    xph = xp.reshape(N, Hh, stride, Wh, stride, Cin)
    xph = jnp.transpose(xph, (0, 2, 4, 1, 3, 5)).reshape(
        N, stride * stride, Hh, Wh, Cin)

    # ---- fold eval-mode BN scale into the 1x1 weights; shifts stay separate ----
    w1 = (params["pw1"] * params["bn1_scale"][None, :]).astype(jnp.float32)       # (Cin, Cin)
    w2t = (params["pw2"] * params["bn2_scale"][None, :]).T.astype(jnp.float32)    # (Cout, Cin)
    b1 = params["bn1_shift"].reshape(1, Cin).astype(jnp.float32)
    b2 = params["bn2_shift"].reshape(Cout, 1).astype(jnp.float32)
    dw1 = params["dw1"].reshape(k * k, Cin).astype(jnp.float32)
    dw2 = params["dw2"].reshape(k * k, Cin).astype(jnp.float32)

    B = _pick_images_per_step(N, Ho * Wo)
    G = N // B
    M = B * Ho * Wo

    kernel = functools.partial(_sepconv_kernel, k=k, stride=stride, pad=padding,
                               oh=Ho, ow=Wo, cin=Cin, cout=Cout, bsz=B)

    flops = N * Ho * Wo * (2 * (2 * k * k * Cin) + 2 * Cin * Cin + 2 * Cin * Cout)
    bytes_accessed = 4 * (N * stride * stride * Hh * Wh * Cin + N * Ho * Wo * Cout
                          + 2 * k * k * Cin + Cin * Cin + Cin * Cout + Cin + Cout)

    const2 = lambda g: (0, 0)

    out = pl.pallas_call(
        kernel,
        out_shape=jax.ShapeDtypeStruct((G, Cout, M), x_nchw.dtype),
        grid_spec=pltpu.PrefetchScalarGridSpec(
            num_scalar_prefetch=0,
            grid=(G,),
            in_specs=[
                pl.BlockSpec((B, stride * stride, Hh, Wh, Cin),
                             lambda g: (g, 0, 0, 0, 0)),
                pl.BlockSpec((k * k, Cin), const2),      # resident across the grid
                pl.BlockSpec((Cin, Cin), const2),        # resident
                pl.BlockSpec((1, Cin), const2),          # resident
                pl.BlockSpec((k * k, Cin), const2),      # resident
                pl.BlockSpec((Cout, Cin), const2),       # resident
                pl.BlockSpec((Cout, 1), const2),         # resident
            ],
            out_specs=pl.BlockSpec((1, Cout, M), lambda g: (g, 0, 0)),
            scratch_shapes=[
                pltpu.VMEM((B, Ho + 2 * padding, Wo + 2 * padding, Cin), jnp.float32),
            ],
        ),
        compiler_params=pltpu.CompilerParams(
            dimension_semantics=("parallel",),
            vmem_limit_bytes=32 * 1024 * 1024),
        cost_estimate=pl.CostEstimate(flops=flops, transcendentals=0,
                                      bytes_accessed=bytes_accessed),
    )(xph, dw1, w1, b1, dw2, w2t, b2)

    # (G, Cout, B*Ho*Wo) is already channel-major -> fold straight into NCHW.
    out = out.reshape(G, Cout, B, Ho, Wo)
    out = jnp.transpose(out, (0, 2, 1, 3, 4)).reshape(N, Cout, Ho, Wo)
    return out


# ----------------------------- parameter init --------------------------------

def init_params(key, channel_in, channel_out, kernel_size=3, eps=1e-5):
    ks = jax.random.split(key, 6)
    dw1 = 0.1 * jax.random.normal(ks[0], (kernel_size, kernel_size, channel_in), jnp.float32)
    pw1 = 0.1 * jax.random.normal(ks[1], (channel_in, channel_in), jnp.float32)
    dw2 = 0.1 * jax.random.normal(ks[2], (kernel_size, kernel_size, channel_in), jnp.float32)
    pw2 = 0.1 * jax.random.normal(ks[3], (channel_in, channel_out), jnp.float32)
    # BN (eval mode): running_mean=0, running_var=1; deterministic affine gamma/beta.
    g1 = 1.0 + 0.1 * jax.random.normal(ks[4], (channel_in,), jnp.float32)
    b1 = 0.05 * jnp.arange(channel_in, dtype=jnp.float32)
    g2 = 1.0 + 0.1 * jax.random.normal(ks[5], (channel_out,), jnp.float32)
    b2 = 0.05 * jnp.arange(channel_out, dtype=jnp.float32)
    inv_std = 1.0 / jnp.sqrt(1.0 + eps)
    return {
        "dw1": dw1, "pw1": pw1, "dw2": dw2, "pw2": pw2,
        "bn1_scale": g1 * inv_std, "bn1_shift": b1,
        "bn2_scale": g2 * inv_std, "bn2_shift": b2,
    }


# ------------------------------ reference ------------------------------------

def reference_forward(x_nchw, params, stride=2, padding=1):
    prec = jax.lax.Precision.HIGHEST

    def dw(x, w_hwc, s):
        C = x.shape[1]
        w = jnp.transpose(w_hwc, (2, 0, 1))[:, None, :, :]  # (C,1,kh,kw)
        return jax.lax.conv_general_dilated(
            x, w, (s, s), [(padding, padding)] * 2, feature_group_count=C,
            dimension_numbers=("NCHW", "OIHW", "NCHW"), precision=prec)

    def pw(x, w_io):
        w = jnp.transpose(w_io, (1, 0))[:, :, None, None]    # (Cout,Cin,1,1)
        return jax.lax.conv_general_dilated(
            x, w, (1, 1), [(0, 0), (0, 0)],
            dimension_numbers=("NCHW", "OIHW", "NCHW"), precision=prec)

    def bn_relu(x, scale, shift):
        return jnp.maximum(x * scale[None, :, None, None] + shift[None, :, None, None], 0.0)

    x = dw(x_nchw, params["dw1"], stride)
    x = pw(x, params["pw1"])
    x = bn_relu(x, params["bn1_scale"], params["bn1_shift"])
    x = dw(x, params["dw2"], 1)
    x = pw(x, params["pw2"])
    x = bn_relu(x, params["bn2_scale"], params["bn2_shift"])
    return x


# -------------------------------- main ----------------------------------------

if __name__ == "__main__":
    key = jax.random.PRNGKey(0)
    k_x, k_p = jax.random.split(key)

    N, C_in, H, W = 2, 4, 16, 16
    C_out = 8

    x = jax.random.normal(k_x, (N, C_in, H, W), jnp.float32)
    params = init_params(k_p, C_in, C_out)

    out = jax.block_until_ready(sep_conv_forward(x, params))
    ref = jax.block_until_ready(reference_forward(x, params))

    assert out.shape == (N, C_out, H // 2, W // 2), out.shape
    np.testing.assert_allclose(np.asarray(out), np.asarray(ref), rtol=1e-4, atol=1e-4)

    print("KERNEL_OK")
</pallas_src>

<mosaic_0001>
module attributes {stable_mosaic.version = 11 : i64} {
  func.func @_sepconv_kernel(%arg0: i32, %arg1: memref<2x4x9x9x4xf32, #tpu.memory_space<vmem>>, %arg2: memref<9x4xf32, #tpu.memory_space<vmem>>, %arg3: memref<4x4xf32, #tpu.memory_space<vmem>>, %arg4: memref<1x4xf32, #tpu.memory_space<vmem>>, %arg5: memref<9x4xf32, #tpu.memory_space<vmem>>, %arg6: memref<8x4xf32, #tpu.memory_space<vmem>>, %arg7: memref<8x1xf32, #tpu.memory_space<vmem>>, %arg8: memref<1x8x128xf32, #tpu.memory_space<vmem>>, %arg9: memref<2x10x10x4xf32, #tpu.memory_space<vmem>>) attributes {dimension_semantics = [#tpu.dimension_semantics<parallel>], iteration_bounds = array<i64: 1>, scalar_prefetch = 0 : i64, scratch_operands = 1 : i64, tpu.core_type = #tpu.core_type<tc>, window_params = [{transform_indices = @transform_0, window_bounds = array<i64: 2, 4, 9, 9, 4>}, {pipeline_mode = #tpu.pipeline_mode<synchronous>, transform_indices = @transform_1, window_bounds = array<i64: 9, 4>}, {pipeline_mode = #tpu.pipeline_mode<synchronous>, transform_indices = @transform_2, window_bounds = array<i64: 4, 4>}, {pipeline_mode = #tpu.pipeline_mode<synchronous>, transform_indices = @transform_3, window_bounds = array<i64: 1, 4>}, {pipeline_mode = #tpu.pipeline_mode<synchronous>, transform_indices = @transform_4, window_bounds = array<i64: 9, 4>}, {pipeline_mode = #tpu.pipeline_mode<synchronous>, transform_indices = @transform_5, window_bounds = array<i64: 8, 4>}, {pipeline_mode = #tpu.pipeline_mode<synchronous>, transform_indices = @transform_6, window_bounds = array<i64: 8, 1>}, {transform_indices = @transform_7, window_bounds = array<i64: 1, 8, 128>}]} {
    %c0 = arith.constant 0 : index
    %c0_0 = arith.constant 0 : index
    %0 = vector.load %arg2[%c0, %c0_0] : memref<9x4xf32, #tpu.memory_space<vmem>>, vector<9x4xf32>
    %c0_1 = arith.constant 0 : index
    %c0_2 = arith.constant 0 : index
    %c0_3 = arith.constant 0 : index
    %c0_4 = arith.constant 0 : index
    %c0_5 = arith.constant 0 : index
    %1 = vector.load %arg1[%c0_1, %c0_2, %c0_3, %c0_4, %c0_5] : memref<2x4x9x9x4xf32, #tpu.memory_space<vmem>>, vector<2x1x8x8x4xf32>
    %2 = vector.shape_cast %1 : vector<2x1x8x8x4xf32> to vector<2x8x8x4xf32>
    %3 = vector.extract_strided_slice %0 {offsets = [0, 0], sizes = [1, 4], strides = [1, 1]} : vector<9x4xf32> to vector<1x4xf32>
    %4 = vector.shape_cast %3 : vector<1x4xf32> to vector<4xf32>
    %5 = vector.shape_cast %4 : vector<4xf32> to vector<1x1x1x4xf32>
    %6 = vector.broadcast %5 : vector<1x1x1x4xf32> to vector<2x8x8x4xf32>
    %7 = arith.mulf %2, %6 : vector<2x8x8x4xf32>
    %c0_6 = arith.constant 0 : index
    %c1 = arith.constant 1 : index
    %c0_7 = arith.constant 0 : index
    %c0_8 = arith.constant 0 : index
    %c0_9 = arith.constant 0 : index
    %8 = vector.load %arg1[%c0_6, %c1, %c0_7, %c0_8, %c0_9] : memref<2x4x9x9x4xf32, #tpu.memory_space<vmem>>, vector<2x1x8x8x4xf32>
    %9 = vector.shape_cast %8 : vector<2x1x8x8x4xf32> to vector<2x8x8x4xf32>
    %10 = vector.extract_strided_slice %0 {offsets = [1, 0], sizes = [1, 4], strides = [1, 1]} : vector<9x4xf32> to vector<1x4xf32>
    %11 = vector.shape_cast %10 : vector<1x4xf32> to vector<4xf32>
    %12 = vector.shape_cast %11 : vector<4xf32> to vector<1x1x1x4xf32>
    %13 = vector.broadcast %12 : vector<1x1x1x4xf32> to vector<2x8x8x4xf32>
    %14 = arith.mulf %9, %13 : vector<2x8x8x4xf32>
    %c0_10 = arith.constant 0 : index
    %c0_11 = arith.constant 0 : index
    %c0_12 = arith.constant 0 : index
    %c1_13 = arith.constant 1 : index
    %c0_14 = arith.constant 0 : index
    %15 = vector.load %arg1[%c0_10, %c0_11, %c0_12, %c1_13, %c0_14] : memref<2x4x9x9x4xf32, #tpu.memory_space<vmem>>, vector<2x1x8x8x4xf32>
    %16 = vector.shape_cast %15 : vector<2x1x8x8x4xf32> to vector<2x8x8x4xf32>
    %17 = vector.extract_strided_slice %0 {offsets = [2, 0], sizes = [1, 4], strides = [1, 1]} : vector<9x4xf32> to vector<1x4xf32>
    %18 = vector.shape_cast %17 : vector<1x4xf32> to vector<4xf32>
    %19 = vector.shape_cast %18 : vector<4xf32> to vector<1x1x1x4xf32>
    %20 = vector.broadcast %19 : vector<1x1x1x4xf32> to vector<2x8x8x4xf32>
    %21 = arith.mulf %16, %20 : vector<2x8x8x4xf32>
    %c0_15 = arith.constant 0 : index
    %c2 = arith.constant 2 : index
    %c0_16 = arith.constant 0 : index
    %c0_17 = arith.constant 0 : index
    %c0_18 = arith.constant 0 : index
    %22 = vector.load %arg1[%c0_15, %c2, %c0_16, %c0_17, %c0_18] : memref<2x4x9x9x4xf32, #tpu.memory_space<vmem>>, vector<2x1x8x8x4xf32>
    %23 = vector.shape_cast %22 : vector<2x1x8x8x4xf32> to vector<2x8x8x4xf32>
    %24 = vector.extract_strided_slice %0 {offsets = [3, 0], sizes = [1, 4], strides = [1, 1]} : vector<9x4xf32> to vector<1x4xf32>
    %25 = vector.shape_cast %24 : vector<1x4xf32> to vector<4xf32>
    %26 = vector.shape_cast %25 : vector<4xf32> to vector<1x1x1x4xf32>
    %27 = vector.broadcast %26 : vector<1x1x1x4xf32> to vector<2x8x8x4xf32>
    %28 = arith.mulf %23, %27 : vector<2x8x8x4xf32>
    %c0_19 = arith.constant 0 : index
    %c3 = arith.constant 3 : index
    %c0_20 = arith.constant 0 : index
    %c0_21 = arith.constant 0 : index
    %c0_22 = arith.constant 0 : index
    %29 = vector.load %arg1[%c0_19, %c3, %c0_20, %c0_21, %c0_22] : memref<2x4x9x9x4xf32, #tpu.memory_space<vmem>>, vector<2x1x8x8x4xf32>
    %30 = vector.shape_cast %29 : vector<2x1x8x8x4xf32> to vector<2x8x8x4xf32>
    %31 = vector.extract_strided_slice %0 {offsets = [4, 0], sizes = [1, 4], strides = [1, 1]} : vector<9x4xf32> to vector<1x4xf32>
    %32 = vector.shape_cast %31 : vector<1x4xf32> to vector<4xf32>
    %33 = vector.shape_cast %32 : vector<4xf32> to vector<1x1x1x4xf32>
    %34 = vector.broadcast %33 : vector<1x1x1x4xf32> to vector<2x8x8x4xf32>
    %35 = arith.mulf %30, %34 : vector<2x8x8x4xf32>
    %c0_23 = arith.constant 0 : index
    %c2_24 = arith.constant 2 : index
    %c0_25 = arith.constant 0 : index
    %c1_26 = arith.constant 1 : index
    %c0_27 = arith.constant 0 : index
    %36 = vector.load %arg1[%c0_23, %c2_24, %c0_25, %c1_26, %c0_27] : memref<2x4x9x9x4xf32, #tpu.memory_space<vmem>>, vector<2x1x8x8x4xf32>
    %37 = vector.shape_cast %36 : vector<2x1x8x8x4xf32> to vector<2x8x8x4xf32>
    %38 = vector.extract_strided_slice %0 {offsets = [5, 0], sizes = [1, 4], strides = [1, 1]} : vector<9x4xf32> to vector<1x4xf32>
    %39 = vector.shape_cast %38 : vector<1x4xf32> to vector<4xf32>
    %40 = vector.shape_cast %39 : vector<4xf32> to vector<1x1x1x4xf32>
    %41 = vector.broadcast %40 : vector<1x1x1x4xf32> to vector<2x8x8x4xf32>
    %42 = arith.mulf %37, %41 : vector<2x8x8x4xf32>
    %c0_28 = arith.constant 0 : index
    %c0_29 = arith.constant 0 : index
    %c1_30 = arith.constant 1 : index
    %c0_31 = arith.constant 0 : index
    %c0_32 = arith.constant 0 : index
    %43 = vector.load %arg1[%c0_28, %c0_29, %c1_30, %c0_31, %c0_32] : memref<2x4x9x9x4xf32, #tpu.memory_space<vmem>>, vector<2x1x8x8x4xf32>
    %44 = vector.shape_cast %43 : vector<2x1x8x8x4xf32> to vector<2x8x8x4xf32>
    %45 = vector.extract_strided_slice %0 {offsets = [6, 0], sizes = [1, 4], strides = [1, 1]} : vector<9x4xf32> to vector<1x4xf32>
    %46 = vector.shape_cast %45 : vector<1x4xf32> to vector<4xf32>
    %47 = vector.shape_cast %46 : vector<4xf32> to vector<1x1x1x4xf32>
    %48 = vector.broadcast %47 : vector<1x1x1x4xf32> to vector<2x8x8x4xf32>
    %49 = arith.mulf %44, %48 : vector<2x8x8x4xf32>
    %c0_33 = arith.constant 0 : index
    %c1_34 = arith.constant 1 : index
    %c1_35 = arith.constant 1 : index
    %c0_36 = arith.constant 0 : index
    %c0_37 = arith.constant 0 : index
    %50 = vector.load %arg1[%c0_33, %c1_34, %c1_35, %c0_36, %c0_37] : memref<2x4x9x9x4xf32, #tpu.memory_space<vmem>>, vector<2x1x8x8x4xf32>
    %51 = vector.shape_cast %50 : vector<2x1x8x8x4xf32> to vector<2x8x8x4xf32>
    %52 = vector.extract_strided_slice %0 {offsets = [7, 0], sizes = [1, 4], strides = [1, 1]} : vector<9x4xf32> to vector<1x4xf32>
    %53 = vector.shape_cast %52 : vector<1x4xf32> to vector<4xf32>
    %54 = vector.shape_cast %53 : vector<4xf32> to vector<1x1x1x4xf32>
    %55 = vector.broadcast %54 : vector<1x1x1x4xf32> to vector<2x8x8x4xf32>
    %56 = arith.mulf %51, %55 : vector<2x8x8x4xf32>
    %c0_38 = arith.constant 0 : index
    %c0_39 = arith.constant 0 : index
    %c1_40 = arith.constant 1 : index
    %c1_41 = arith.constant 1 : index
    %c0_42 = arith.constant 0 : index
    %57 = vector.load %arg1[%c0_38, %c0_39, %c1_40, %c1_41, %c0_42] : memref<2x4x9x9x4xf32, #tpu.memory_space<vmem>>, vector<2x1x8x8x4xf32>
    %58 = vector.shape_cast %57 : vector<2x1x8x8x4xf32> to vector<2x8x8x4xf32>
    %59 = vector.extract_strided_slice %0 {offsets = [8, 0], sizes = [1, 4], strides = [1, 1]} : vector<9x4xf32> to vector<1x4xf32>
    %60 = vector.shape_cast %59 : vector<1x4xf32> to vector<4xf32>
    %61 = vector.shape_cast %60 : vector<4xf32> to vector<1x1x1x4xf32>
    %62 = vector.broadcast %61 : vector<1x1x1x4xf32> to vector<2x8x8x4xf32>
    %63 = arith.mulf %58, %62 : vector<2x8x8x4xf32>
    %64 = arith.addf %7, %14 : vector<2x8x8x4xf32>
    %65 = arith.addf %21, %28 : vector<2x8x8x4xf32>
    %66 = arith.addf %35, %42 : vector<2x8x8x4xf32>
    %67 = arith.addf %49, %56 : vector<2x8x8x4xf32>
    %68 = arith.addf %64, %65 : vector<2x8x8x4xf32>
    %69 = arith.addf %66, %67 : vector<2x8x8x4xf32>
    %70 = arith.addf %68, %69 : vector<2x8x8x4xf32>
    %71 = arith.addf %70, %63 : vector<2x8x8x4xf32>
    %72 = vector.shape_cast %71 : vector<2x8x8x4xf32> to vector<128x4xf32>
    %c0_43 = arith.constant 0 : index
    %c0_44 = arith.constant 0 : index
    %73 = vector.load %arg3[%c0_43, %c0_44] : memref<4x4xf32, #tpu.memory_space<vmem>>, vector<4x4xf32>
    %cst = arith.constant dense<0.000000e+00> : vector<128x4xf32>
    %74 = tpu.matmul %72, %73, %cst {dimension_numbers = #tpu.dot_dimension_numbers<[1], [0], [0], [1], [0, 0, 1, 1], [], []>} : vector<128x4xf32>, vector<4x4xf32>, vector<128x4xf32> -> vector<128x4xf32>
    %c0_45 = arith.constant 0 : index
    %c0_46 = arith.constant 0 : index
    %75 = vector.load %arg4[%c0_45, %c0_46] : memref<1x4xf32, #tpu.memory_space<vmem>>, vector<1x4xf32>
    %76 = vector.broadcast %75 : vector<1x4xf32> to vector<128x4xf32>
    %77 = arith.addf %74, %76 : vector<128x4xf32>
    %cst_47 = arith.constant 0.000000e+00 : f32
    %78 = vector.broadcast %cst_47 : f32 to vector<128x4xf32>
    %79 = arith.maximumf %77, %78 : vector<128x4xf32>
    %cst_48 = arith.constant 0.000000e+00 : f32
    %80 = vector.broadcast %cst_48 : f32 to vector<2x1x10x4xf32>
    %c0_49 = arith.constant 0 : index
    %c0_50 = arith.constant 0 : index
    %c0_51 = arith.constant 0 : index
    %c0_52 = arith.constant 0 : index
    %81 = vector.load %arg9[%c0_49, %c0_50, %c0_51, %c0_52] : memref<2x10x10x4xf32, #tpu.memory_space<vmem>>, vector<2x1x10x4xf32>
    tpu.vector_store %arg9[%c0_49, %c0_50, %c0_51, %c0_52], %80 {strides = array<i32>} : memref<2x10x10x4xf32, #tpu.memory_space<vmem>>, vector<2x1x10x4xf32>,
    %cst_53 = arith.constant 0.000000e+00 : f32
    %82 = vector.broadcast %cst_53 : f32 to vector<2x1x10x4xf32>
    %c0_54 = arith.constant 0 : index
    %c9 = arith.constant 9 : index
    %c0_55 = arith.constant 0 : index
    %c0_56 = arith.constant 0 : index
    %83 = vector.load %arg9[%c0_54, %c9, %c0_55, %c0_56] : memref<2x10x10x4xf32, #tpu.memory_space<vmem>>, vector<2x1x10x4xf32>
    tpu.vector_store %arg9[%c0_54, %c9, %c0_55, %c0_56], %82 {strides = array<i32>} : memref<2x10x10x4xf32, #tpu.memory_space<vmem>>, vector<2x1x10x4xf32>,
    %cst_57 = arith.constant 0.000000e+00 : f32
    %84 = vector.broadcast %cst_57 : f32 to vector<2x10x1x4xf32>
    %c0_58 = arith.constant 0 : index
    %c0_59 = arith.constant 0 : index
    %c0_60 = arith.constant 0 : index
    %c0_61 = arith.constant 0 : index
    %85 = vector.load %arg9[%c0_58, %c0_59, %c0_60, %c0_61] : memref<2x10x10x4xf32, #tpu.memory_space<vmem>>, vector<2x10x1x4xf32>
    tpu.vector_store %arg9[%c0_58, %c0_59, %c0_60, %c0_61], %84 {strides = array<i32>} : memref<2x10x10x4xf32, #tpu.memory_space<vmem>>, vector<2x10x1x4xf32>,
    %cst_62 = arith.constant 0.000000e+00 : f32
    %86 = vector.broadcast %cst_62 : f32 to vector<2x10x1x4xf32>
    %c0_63 = arith.constant 0 : index
    %c0_64 = arith.constant 0 : index
    %c9_65 = arith.constant 9 : index
    %c0_66 = arith.constant 0 : index
    %87 = vector.load %arg9[%c0_63, %c0_64, %c9_65, %c0_66] : memref<2x10x10x4xf32, #tpu.memory_space<vmem>>, vector<2x10x1x4xf32>
    tpu.vector_store %arg9[%c0_63, %c0_64, %c9_65, %c0_66], %86 {strides = array<i32>} : memref<2x10x10x4xf32, #tpu.memory_space<vmem>>, vector<2x10x1x4xf32>,
    %88 = vector.shape_cast %79 : vector<128x4xf32> to vector<2x8x8x4xf32>
    %c0_67 = arith.constant 0 : index
    %c1_68 = arith.constant 1 : index
    %c1_69 = arith.constant 1 : index
    %c0_70 = arith.constant 0 : index
    %89 = vector.load %arg9[%c0_67, %c1_68, %c1_69, %c0_70] : memref<2x10x10x4xf32, #tpu.memory_space<vmem>>, vector<2x8x8x4xf32>
    tpu.vector_store %arg9[%c0_67, %c1_68, %c1_69, %c0_70], %88 {strides = array<i32>} : memref<2x10x10x4xf32, #tpu.memory_space<vmem>>, vector<2x8x8x4xf32>,
    %c0_71 = arith.constant 0 : index
    %c0_72 = arith.constant 0 : index
    %90 = vector.load %arg5[%c0_71, %c0_72] : memref<9x4xf32, #tpu.memory_space<vmem>>, vector<9x4xf32>
    %c0_73 = arith.constant 0 : index
    %c0_74 = arith.constant 0 : index
    %c0_75 = arith.constant 0 : index
    %c0_76 = arith.constant 0 : index
    %91 = vector.load %arg9[%c0_73, %c0_74, %c0_75, %c0_76] : memref<2x10x10x4xf32, #tpu.memory_space<vmem>>, vector<2x8x8x4xf32>
    %92 = vector.extract_strided_slice %90 {offsets = [0, 0], sizes = [1, 4], strides = [1, 1]} : vector<9x4xf32> to vector<1x4xf32>
    %93 = vector.shape_cast %92 : vector<1x4xf32> to vector<4xf32>
    %94 = vector.shape_cast %93 : vector<4xf32> to vector<1x1x1x4xf32>
    %95 = vector.broadcast %94 : vector<1x1x1x4xf32> to vector<2x8x8x4xf32>
    %96 = arith.mulf %91, %95 : vector<2x8x8x4xf32>
    %c0_77 = arith.constant 0 : index
    %c0_78 = arith.constant 0 : index
    %c1_79 = arith.constant 1 : index
    %c0_80 = arith.constant 0 : index
    %97 = vector.load %arg9[%c0_77, %c0_78, %c1_79, %c0_80] : memref<2x10x10x4xf32, #tpu.memory_space<vmem>>, vector<2x8x8x4xf32>
    %98 = vector.extract_strided_slice %90 {offsets = [1, 0], sizes = [1, 4], strides = [1, 1]} : vector<9x4xf32> to vector<1x4xf32>
    %99 = vector.shape_cast %98 : vector<1x4xf32> to vector<4xf32>
    %100 = vector.shape_cast %99 : vector<4xf32> to vector<1x1x1x4xf32>
    %101 = vector.broadcast %100 : vector<1x1x1x4xf32> to vector<2x8x8x4xf32>
    %102 = arith.mulf %97, %101 : vector<2x8x8x4xf32>
    %c0_81 = arith.constant 0 : index
    %c0_82 = arith.constant 0 : index
    %c2_83 = arith.constant 2 : index
    %c0_84 = arith.constant 0 : index
    %103 = vector.load %arg9[%c0_81, %c0_82, %c2_83, %c0_84] : memref<2x10x10x4xf32, #tpu.memory_space<vmem>>, vector<2x8x8x4xf32>
    %104 = vector.extract_strided_slice %90 {offsets = [2, 0], sizes = [1, 4], strides = [1, 1]} : vector<9x4xf32> to vector<1x4xf32>
    %105 = vector.shape_cast %104 : vector<1x4xf32> to vector<4xf32>
    %106 = vector.shape_cast %105 : vector<4xf32> to vector<1x1x1x4xf32>
    %107 = vector.broadcast %106 : vector<1x1x1x4xf32> to vector<2x8x8x4xf32>
    %108 = arith.mulf %103, %107 : vector<2x8x8x4xf32>
    %c0_85 = arith.constant 0 : index
    %c1_86 = arith.constant 1 : index
    %c0_87 = arith.constant 0 : index
    %c0_88 = arith.constant 0 : index
    %109 = vector.load %arg9[%c0_85, %c1_86, %c0_87, %c0_88] : memref<2x10x10x4xf32, #tpu.memory_space<vmem>>, vector<2x8x8x4xf32>
    %110 = vector.extract_strided_slice %90 {offsets = [3, 0], sizes = [1, 4], strides = [1, 1]} : vector<9x4xf32> to vector<1x4xf32>
    %111 = vector.shape_cast %110 : vector<1x4xf32> to vector<4xf32>
    %112 = vector.shape_cast %111 : vector<4xf32> to vector<1x1x1x4xf32>
    %113 = vector.broadcast %112 : vector<1x1x1x4xf32> to vector<2x8x8x4xf32>
    %114 = arith.mulf %109, %113 : vector<2x8x8x4xf32>
    %c0_89 = arith.constant 0 : index
    %c1_90 = arith.constant 1 : index
    %c1_91 = arith.constant 1 : index
    %c0_92 = arith.constant 0 : index
    %115 = vector.load %arg9[%c0_89, %c1_90, %c1_91, %c0_92] : memref<2x10x10x4xf32, #tpu.memory_space<vmem>>, vector<2x8x8x4xf32>
    %116 = vector.extract_strided_slice %90 {offsets = [4, 0], sizes = [1, 4], strides = [1, 1]} : vector<9x4xf32> to vector<1x4xf32>
    %117 = vector.shape_cast %116 : vector<1x4xf32> to vector<4xf32>
    %118 = vector.shape_cast %117 : vector<4xf32> to vector<1x1x1x4xf32>
    %119 = vector.broadcast %118 : vector<1x1x1x4xf32> to vector<2x8x8x4xf32>
    %120 = arith.mulf %115, %119 : vector<2x8x8x4xf32>
    %c0_93 = arith.constant 0 : index
    %c1_94 = arith.constant 1 : index
    %c2_95 = arith.constant 2 : index
    %c0_96 = arith.constant 0 : index
    %121 = vector.load %arg9[%c0_93, %c1_94, %c2_95, %c0_96] : memref<2x10x10x4xf32, #tpu.memory_space<vmem>>, vector<2x8x8x4xf32>
    %122 = vector.extract_strided_slice %90 {offsets = [5, 0], sizes = [1, 4], strides = [1, 1]} : vector<9x4xf32> to vector<1x4xf32>
    %123 = vector.shape_cast %122 : vector<1x4xf32> to vector<4xf32>
    %124 = vector.shape_cast %123 : vector<4xf32> to vector<1x1x1x4xf32>
    %125 = vector.broadcast %124 : vector<1x1x1x4xf32> to vector<2x8x8x4xf32>
    %126 = arith.mulf %121, %125 : vector<2x8x8x4xf32>
    %c0_97 = arith.constant 0 : index
    %c2_98 = arith.constant 2 : index
    %c0_99 = arith.constant 0 : index
    %c0_100 = arith.constant 0 : index
    %127 = vector.load %arg9[%c0_97, %c2_98, %c0_99, %c0_100] : memref<2x10x10x4xf32, #tpu.memory_space<vmem>>, vector<2x8x8x4xf32>
    %128 = vector.extract_strided_slice %90 {offsets = [6, 0], sizes = [1, 4], strides = [1, 1]} : vector<9x4xf32> to vector<1x4xf32>
    %129 = vector.shape_cast %128 : vector<1x4xf32> to vector<4xf32>
    %130 = vector.shape_cast %129 : vector<4xf32> to vector<1x1x1x4xf32>
    %131 = vector.broadcast %130 : vector<1x1x1x4xf32> to vector<2x8x8x4xf32>
    %132 = arith.mulf %127, %131 : vector<2x8x8x4xf32>
    %c0_101 = arith.constant 0 : index
    %c2_102 = arith.constant 2 : index
    %c1_103 = arith.constant 1 : index
    %c0_104 = arith.constant 0 : index
    %133 = vector.load %arg9[%c0_101, %c2_102, %c1_103, %c0_104] : memref<2x10x10x4xf32, #tpu.memory_space<vmem>>, vector<2x8x8x4xf32>
    %134 = vector.extract_strided_slice %90 {offsets = [7, 0], sizes = [1, 4], strides = [1, 1]} : vector<9x4xf32> to vector<1x4xf32>
    %135 = vector.shape_cast %134 : vector<1x4xf32> to vector<4xf32>
    %136 = vector.shape_cast %135 : vector<4xf32> to vector<1x1x1x4xf32>
    %137 = vector.broadcast %136 : vector<1x1x1x4xf32> to vector<2x8x8x4xf32>
    %138 = arith.mulf %133, %137 : vector<2x8x8x4xf32>
    %c0_105 = arith.constant 0 : index
    %c2_106 = arith.constant 2 : index
    %c2_107 = arith.constant 2 : index
    %c0_108 = arith.constant 0 : index
    %139 = vector.load %arg9[%c0_105, %c2_106, %c2_107, %c0_108] : memref<2x10x10x4xf32, #tpu.memory_space<vmem>>, vector<2x8x8x4xf32>
    %140 = vector.extract_strided_slice %90 {offsets = [8, 0], sizes = [1, 4], strides = [1, 1]} : vector<9x4xf32> to vector<1x4xf32>
    %141 = vector.shape_cast %140 : vector<1x4xf32> to vector<4xf32>
    %142 = vector.shape_cast %141 : vector<4xf32> to vector<1x1x1x4xf32>
    %143 = vector.broadcast %142 : vector<1x1x1x4xf32> to vector<2x8x8x4xf32>
    %144 = arith.mulf %139, %143 : vector<2x8x8x4xf32>
    %145 = arith.addf %96, %102 : vector<2x8x8x4xf32>
    %146 = arith.addf %108, %114 : vector<2x8x8x4xf32>
    %147 = arith.addf %120, %126 : vector<2x8x8x4xf32>
    %148 = arith.addf %132, %138 : vector<2x8x8x4xf32>
    %149 = arith.addf %145, %146 : vector<2x8x8x4xf32>
    %150 = arith.addf %147, %148 : vector<2x8x8x4xf32>
    %151 = arith.addf %149, %150 : vector<2x8x8x4xf32>
    %152 = arith.addf %151, %144 : vector<2x8x8x4xf32>
    %c0_109 = arith.constant 0 : index
    %c0_110 = arith.constant 0 : index
    %153 = vector.load %arg6[%c0_109, %c0_110] : memref<8x4xf32, #tpu.memory_space<vmem>>, vector<8x4xf32>
    %154 = vector.shape_cast %152 : vector<2x8x8x4xf32> to vector<128x4xf32>
    %cst_111 = arith.constant dense<0.000000e+00> : vector<8x128xf32>
    %155 = tpu.matmul %153, %154, %cst_111 {dimension_numbers = #tpu.dot_dimension_numbers<[1], [1], [0], [0], [0, 0, 1, 0], [], []>} : vector<8x4xf32>, vector<128x4xf32>, vector<8x128xf32> -> vector<8x128xf32>
    %c0_112 = arith.constant 0 : index
    %c0_113 = arith.constant 0 : index
    %156 = vector.load %arg7[%c0_112, %c0_113] : memref<8x1xf32, #tpu.memory_space<vmem>>, vector<8x1xf32>
    %157 = vector.broadcast %156 : vector<8x1xf32> to vector<8x128xf32>
    %158 = arith.addf %155, %157 : vector<8x128xf32>
    %cst_114 = arith.constant 0.000000e+00 : f32
    %159 = vector.broadcast %cst_114 : f32 to vector<8x128xf32>
    %160 = arith.maximumf %158, %159 : vector<8x128xf32>
    %c0_115 = arith.constant 0 : index
    %c0_116 = arith.constant 0 : index
    %c0_117 = arith.constant 0 : index
    %161 = vector.load %arg8[%c0_115, %c0_116, %c0_117] : memref<1x8x128xf32, #tpu.memory_space<vmem>>, vector<1x8x128xf32>
    %162 = vector.shape_cast %161 : vector<1x8x128xf32> to vector<8x128xf32>
    %163 = vector.shape_cast %160 : vector<8x128xf32> to vector<1x8x128xf32>
    tpu.vector_store %arg8[%c0_115, %c0_116, %c0_117], %163 {strides = array<i32>} : memref<1x8x128xf32, #tpu.memory_space<vmem>>, vector<1x8x128xf32>,
    return
  }
  func.func @transform_0(%arg0: i32) -> (i32, i32, i32, i32, i32) {
    %c0_i32 = arith.constant 0 : i32
    %c0_i32_0 = arith.constant 0 : i32
    %c0_i32_1 = arith.constant 0 : i32
    %c0_i32_2 = arith.constant 0 : i32
    %c0_i32_3 = arith.constant 0 : i32
    return %arg0, %c0_i32, %c0_i32_0, %c0_i32_1, %c0_i32_2 : i32, i32, i32, i32, i32
  }
  func.func @transform_1(%arg0: i32) -> (i32, i32) {
    %c0_i32 = arith.constant 0 : i32
    %c0_i32_0 = arith.constant 0 : i32
    %c0_i32_1 = arith.constant 0 : i32
    return %c0_i32, %c0_i32_0 : i32, i32
  }
  func.func @transform_2(%arg0: i32) -> (i32, i32) {
    %c0_i32 = arith.constant 0 : i32
    %c0_i32_0 = arith.constant 0 : i32
    %c0_i32_1 = arith.constant 0 : i32
    return %c0_i32, %c0_i32_0 : i32, i32
  }
  func.func @transform_3(%arg0: i32) -> (i32, i32) {
    %c0_i32 = arith.constant 0 : i32
    %c0_i32_0 = arith.constant 0 : i32
    %c0_i32_1 = arith.constant 0 : i32
    return %c0_i32, %c0_i32_0 : i32, i32
  }
  func.func @transform_4(%arg0: i32) -> (i32, i32) {
    %c0_i32 = arith.constant 0 : i32
    %c0_i32_0 = arith.constant 0 : i32
    %c0_i32_1 = arith.constant 0 : i32
    return %c0_i32, %c0_i32_0 : i32, i32
  }
  func.func @transform_5(%arg0: i32) -> (i32, i32) {
    %c0_i32 = arith.constant 0 : i32
    %c0_i32_0 = arith.constant 0 : i32
    %c0_i32_1 = arith.constant 0 : i32
    return %c0_i32, %c0_i32_0 : i32, i32
  }
  func.func @transform_6(%arg0: i32) -> (i32, i32) {
    %c0_i32 = arith.constant 0 : i32
    %c0_i32_0 = arith.constant 0 : i32
    %c0_i32_1 = arith.constant 0 : i32
    return %c0_i32, %c0_i32_0 : i32, i32
  }
  func.func @transform_7(%arg0: i32) -> (i32, i32, i32) {
    %c0_i32 = arith.constant 0 : i32
    %c0_i32_0 = arith.constant 0 : i32
    %c0_i32_1 = arith.constant 0 : i32
    return %arg0, %c0_i32, %c0_i32_0 : i32, i32, i32
  }
}

</mosaic_0001>

<bundles_post_ra>
// kernel: tpu_custom_call.1
= control target key start
LH: loop header
LB: loop body
LE: loop exit
PB: predicated region body
PF: predicated region fallthrough
CT: control target
= control target key end

     0   :  { %vm543_vm0 = vcmask 1043456   ;;  %v45_v1 = vlaneseq  ;;  %vm494_vm1 = vcmask 31744   ;;  %s2738_s0 = inlined_call_operand.vmem [shape: f32[2,4,9,9,4], index: 0, kind: input, shape index: {}]   ;;  %s2739_s1 = inlined_call_operand.vmem [shape: f32[9,4], index: 1, kind: input, shape index: {}]   ;;  %s2740_s2 = inlined_call_operand.vmem [shape: f32[4,4], index: 2, kind: input, shape index: {}]   ;;  %s2741_s3 = inlined_call_operand.vmem [shape: f32[1,4], index: 3, kind: input, shape index: {}]   ;;  %s2742_s4 = inlined_call_operand.vmem [shape: f32[9,4], index: 4, kind: input, shape index: {}]   ;;  %s2743_s5 = inlined_call_operand.vmem [shape: f32[8,4], index: 5, kind: input, shape index: {}]   ;;  %s2744_s6 = inlined_call_operand.vmem [shape: f32[8,1], index: 6, kind: input, shape index: {}]   ;;  %s2745_s7 = inlined_call_operand.hbm [shape: f32[1,8,128], index: 7, kind: output, shape index: {}]  }
   0x1   :  { %v486_v0 = vld [vmem:[%s2740_s2] sm:$0xf]  ;;  %v1375_v6 = vld [vmem:[%s2738_s0 + $0x90] sm:$0xff]  ;;  %v1749_v24 = vld [vmem:[%s2739_s1 + $0x8] ss:$0 sm:$0xff] }
   0x2   :  { %1558 = vmatprep.subr.msk.mxu0 %vm543_vm0, %v486_v0  ;;  %v1693_v2 = vshrl.u32 %v45_v1, 7  ;;  %v27_v3 = vld [vmem:[%s2739_s1] sm:$0xff]  ;;  %v1407_v12 = vld [vmem:[%s2738_s0 + $0x1b0] sm:$0xff] }
   0x3   :  { %1559 = vmatpush3.msk.msra.mxu0 %vm543_vm0, %v486_v0  ;;  %v29_v4 = vld [vmem:[%s2738_s0] sm:$0xff]  ;;  %v1439_v22 = vld [vmem:[%s2738_s0 + $0x10] sm:$0xff] }
   0x4   :  { %v47_v5 = vsub.s32 0, %v1693_v2  ;;  %v84_v7 = vsub.s32 1, %v1693_v2  ;;  %v102_v8 = vld [vmem:[%s2738_s0 + $0x1] sm:$0xff]  ;;  %v120_v9 = vsub.s32 2, %v1693_v2  ;;  %v157_v10 = vsub.s32 3, %v1693_v2  ;;  %v1471_v33 = vld [vmem:[%s2738_s0 + $0x11] sm:$0xff] }
   0x5   :  { %v1391_v11 = vld [vmem:[%s2738_s0 + $0x120] sm:$0xff]  ;;  %v194_v13 = vsub.s32 4, %v1693_v2  ;;  %v230_v14 = vsub.s32 5, %v1693_v2  ;;  %v267_v15 = vsub.s32 6, %v1693_v2  ;;  %v304_v16 = vsub.s32 7, %v1693_v2  ;;  %v1392_v38 = vld [vmem:[%s2738_s0 + $0x130] sm:$0xff] }
   0x6   :  { %v1723_v17 = vrot.slane %v27_v3, %v47_v5  ;;  %v1727_v18 = vrot.slane %v27_v3, %v84_v7  ;;  %v1731_v19 = vrot.slane %v27_v3, %v120_v9  ;;  %v1735_v20 = vrot.slane %v27_v3, %v157_v10  ;;  %v1423_v21 = vld [vmem:[%s2738_s0 + $0x121] sm:$0xff]  ;;  %v1424_v40 = vld [vmem:[%s2738_s0 + $0x131] sm:$0xff] }
   0x7   :  { %v1455_v23 = vld [vmem:[%s2738_s0 + $0xa0] sm:$0xff]  ;;  %v1753_v25 = vrot.slane %v27_v3, %v194_v13  ;;  %v1757_v26 = vrot.slane %v27_v3, %v230_v14  ;;  %v1761_v27 = vrot.slane %v27_v3, %v267_v15  ;;  %v1765_v28 = vrot.slane %v27_v3, %v304_v16  ;;  %v1456_v46 = vld [vmem:[%s2738_s0 + $0xb0] sm:$0xff] }
   0x8   :  { %v49_v29 = vmul.f32 %v1723_v17, %v29_v4  ;;  %v86_v30 = vmul.f32 %v1375_v6, %v1727_v18  ;;  %v122_v31 = vmul.f32 %v1731_v19, %v102_v8  ;;  %v159_v32 = vmul.f32 %v1391_v11, %v1735_v20  ;;  %v1408_v39 = vld [vmem:[%s2738_s0 + $0x1c0] sm:$0xff]  ;;  %v1409_v61 = vld [vmem:[%s2738_s0 + $0x1d0] sm:$0xff] }
   0x9   :  { %v196_v34 = vmul.f32 %v1407_v12, %v1753_v25  ;;  %v232_v35 = vmul.f32 %v1423_v21, %v1757_v26  ;;  %v269_v36 = vmul.f32 %v1439_v22, %v1761_v27  ;;  %v306_v37 = vmul.f32 %v1455_v23, %v1765_v28  ;;  %v1440_v45 = vld [vmem:[%s2738_s0 + $0x20] sm:$0xff]  ;;  %v1441_v4 = vld [vmem:[%s2738_s0 + $0x30] sm:$0xff] }
   0xa   :  { %v342_v41 = vmul.f32 %v1749_v24, %v1471_v33  ;;  %v358_v42 = vadd.f32 %v86_v30, %v49_v29  ;;  %v374_v43 = vadd.f32 %v159_v32, %v122_v31  ;;  %v50_v44 = vmul.f32 %v1439_v22, %v1723_v17  ;;  %v1472_v55 = vld [vmem:[%s2738_s0 + $0x21] sm:$0xff] }
   0xb   :  { %v390_v47 = vadd.f32 %v232_v35, %v196_v34  ;;  %v406_v48 = vadd.f32 %v306_v37, %v269_v36  ;;  %v87_v49 = vmul.f32 %v1455_v23, %v1727_v18  ;;  %v123_v50 = vmul.f32 %v1471_v33, %v1731_v19  ;;  %v1393_v60 = vld [vmem:[%s2738_s0 + $0x140] sm:$0xff]  ;;  %v1473_v35 = vld [vmem:[%s2738_s0 + $0x31] sm:$0xff] }
   0xc   :  { %v422_v51 = vadd.f32 %v374_v43, %v358_v42  ;;  %v160_v52 = vmul.f32 %v1392_v38, %v1735_v20  ;;  %v197_v53 = vmul.f32 %v1408_v39, %v1753_v25  ;;  %v233_v54 = vmul.f32 %v1424_v40, %v1757_v26  ;;  %v1425_v62 = vld [vmem:[%s2738_s0 + $0x141] sm:$0xff]  ;;  %v1394_v36 = vld [vmem:[%s2738_s0 + $0x150] sm:$0xff] }
   0xd   :  { %v438_v56 = vadd.f32 %v406_v48, %v390_v47  ;;  %v270_v57 = vmul.f32 %v1440_v45, %v1761_v27  ;;  %v307_v58 = vmul.f32 %v1456_v46, %v1765_v28  ;;  %v343_v59 = vmul.f32 %v1749_v24, %v1472_v55  ;;  %v1457_v6 = vld [vmem:[%s2738_s0 + $0xc0] sm:$0xff]  ;;  %v1426_v42 = vld [vmem:[%s2738_s0 + $0x151] sm:$0xff] }
   0xe   :  { %v359_v63 = vadd.f32 %v87_v49, %v50_v44  ;;  %v375_v0 = vadd.f32 %v160_v52, %v123_v50  ;;  %v391_v1 = vadd.f32 %v233_v54, %v197_v53  ;;  %v51_v3 = vmul.f32 %v1440_v45, %v1723_v17  ;;  %v1410_v37 = vld [vmem:[%s2738_s0 + $0x1e0] sm:$0xff]  ;;  %v1458_v48 = vld [vmem:[%s2738_s0 + $0xd0] sm:$0xff] }
   0xf   :  { %v454_v8 = vadd.f32 %v438_v56, %v422_v51  ;;  %v407_v11 = vadd.f32 %v307_v58, %v270_v57  ;;  %v88_v12 = vmul.f32 %v1456_v46, %v1727_v18  ;;  %v124_v21 = vmul.f32 %v1472_v55, %v1731_v19  ;;  %v1442_v43 = vld [vmem:[%s2738_s0 + $0x40] sm:$0xff] }
  0x10   :  { %v423_v22 = vadd.f32 %v375_v0, %v359_v63  ;;  %v161_v23 = vmul.f32 %v1393_v60, %v1735_v20  ;;  %v198_v29 = vmul.f32 %v1409_v61, %v1753_v25  ;;  %v234_v30 = vmul.f32 %v1425_v62, %v1757_v26  ;;  %v1474_v57 = vld [vmem:[%s2738_s0 + $0x41] sm:$0xff] }
  0x11   :  { %v470_v31 = vadd.f32 %v454_v8, %v342_v41  ;;  %v439_v32 = vadd.f32 %v407_v11, %v391_v1  ;;  %v271_v33 = vmul.f32 %v1441_v4, %v1761_v27  ;;  %v308_v34 = vmul.f32 %v1457_v6, %v1765_v28  ;;  %v1395_v58 = vld [vmem:[%s2738_s0 + $0x160] sm:$0xff]  ;;  %v1443_v1 = vld [vmem:[%s2738_s0 + $0x50] sm:$0xff] }
  0x12   :  { %v344_v38 = vmul.f32 %v1749_v24, %v1473_v35  ;;  %v360_v39 = vadd.f32 %v88_v12, %v51_v3  ;;  %v376_v40 = vadd.f32 %v161_v23, %v124_v21  ;;  %v392_v41 = vadd.f32 %v234_v30, %v198_v29  ;;  %v1427_v0 = vld [vmem:[%s2738_s0 + $0x161] sm:$0xff] }
  0x13   :  { %1560 = vmatprep.mubr.msk.f32.mxu0 %vm494_vm1, %v470_v31  ;;  %v455_v44 = vadd.f32 %v439_v32, %v423_v22  ;;  %v408_v45 = vadd.f32 %v308_v34, %v271_v33  ;;  %v52_v46 = vmul.f32 %v1441_v4, %v1723_v17  ;;  %v89_v47 = vmul.f32 %v1457_v6, %v1727_v18  ;;  %v1459_v11 = vld [vmem:[%s2738_s0 + $0xe0] sm:$0xff]  ;;  %v1475_v33 = vld [vmem:[%s2738_s0 + $0x51] sm:$0xff] }
  0x14   :  { %v424_v49 = vadd.f32 %v376_v40, %v360_v39  ;;  %v125_v50 = vmul.f32 %v1473_v35, %v1731_v19  ;;  %v162_v51 = vmul.f32 %v1394_v36, %v1735_v20  ;;  %v199_v52 = vmul.f32 %v1410_v37, %v1753_v25  ;;  %v1396_v34 = vld [vmem:[%s2738_s0 + $0x170] sm:$0xff]  ;;  %v1412_v39 = vld [vmem:[%s2738_s0 + $0x200] sm:$0xff] }
  0x15   :  { %v471_v53 = vadd.f32 %v455_v44, %v343_v59  ;;  %v440_v54 = vadd.f32 %v408_v45, %v392_v41  ;;  %v235_v55 = vmul.f32 %v1426_v42, %v1757_v26  ;;  %v272_v56 = vmul.f32 %v1442_v43, %v1761_v27  ;;  %v1411_v59 = vld [vmem:[%s2738_s0 + $0x1f0] sm:$0xff]  ;;  %v1444_v41 = vld [vmem:[%s2738_s0 + $0x60] sm:$0xff] }
  0x16   :  { %v309_v60 = vmul.f32 %v1458_v48, %v1765_v28  ;;  %v345_v61 = vmul.f32 %v1749_v24, %v1474_v57  ;;  %v361_v62 = vadd.f32 %v89_v47, %v52_v46  ;;  %v377_v63 = vadd.f32 %v162_v51, %v125_v50  ;;  %v1428_v40 = vld [vmem:[%s2738_s0 + $0x171] sm:$0xff] }
  0x17   :  { %1561 = vmatmul.mubr.msk.f32.vlgmr.msra.gmra.mxu0 %vm494_vm1, %v471_v53  ;;  %v456_v3 = vadd.f32 %v440_v54, %v424_v49  ;;  %v393_v4 = vadd.f32 %v235_v55, %v199_v52  ;;  %v53_v6 = vmul.f32 %v1442_v43, %v1723_v17  ;;  %v90_v8 = vmul.f32 %v1458_v48, %v1727_v18  ;;  %v1460_v46 = vld [vmem:[%s2738_s0 + $0xf0] sm:$0xff]  ;;  %v1476_v55 = vld [vmem:[%s2738_s0 + $0x61] sm:$0xff] }
  0x18   :  { %v409_v12 = vadd.f32 %v309_v60, %v272_v56  ;;  %v425_v21 = vadd.f32 %v377_v63, %v361_v62  ;;  %v126_v22 = vmul.f32 %v1474_v57, %v1731_v19  ;;  %v163_v23 = vmul.f32 %v1395_v58, %v1735_v20  ;;  %v1397_v62 = vld [vmem:[%s2738_s0 + $0x180] sm:$0xff]  ;;  %v1413_v63 = vld [vmem:[%s2738_s0 + $0x210] sm:$0xff] }
  0x19   :  { %v472_v29 = vadd.f32 %v456_v3, %v344_v38  ;;  %v200_v30 = vmul.f32 %v1411_v59, %v1753_v25  ;;  %v236_v31 = vmul.f32 %v1427_v0, %v1757_v26  ;;  %v273_v32 = vmul.f32 %v1443_v1, %v1761_v27  ;;  %v1429_v59 = vld [vmem:[%s2738_s0 + $0x181] sm:$0xff] }
  0x1a   :  { %v441_v35 = vadd.f32 %v409_v12, %v393_v4  ;;  %v310_v36 = vmul.f32 %v1459_v11, %v1765_v28  ;;  %v346_v37 = vmul.f32 %v1749_v24, %v1475_v33  ;;  %v362_v38 = vadd.f32 %v90_v8, %v53_v6  ;;  %v1445_v4 = vld [vmem:[%s2738_s0 + $0x70] sm:$0xff]  ;;  %v1461_v6 = vld [vmem:[%s2738_s0 + $0x100] sm:$0xff] }
  0x1b   :  { %1563 = vmatprep.mubr.msk.f32.mxu0 %vm494_vm1, %v472_v29  ;;  %v378_v42 = vadd.f32 %v163_v23, %v126_v22  ;;  %v394_v43 = vadd.f32 %v236_v31, %v200_v30  ;;  %v54_v44 = vmul.f32 %v1443_v1, %v1723_v17  ;;  %v91_v45 = vmul.f32 %v1459_v11, %v1727_v18 }
  0x1c   :  { %v457_v47 = vadd.f32 %v441_v35, %v425_v21  ;;  %v410_v48 = vadd.f32 %v310_v36, %v273_v32  ;;  %v127_v49 = vmul.f32 %v1475_v33, %v1731_v19  ;;  %v164_v50 = vmul.f32 %v1396_v34, %v1735_v20  ;;  %v1477_v35 = vld [vmem:[%s2738_s0 + $0x71] sm:$0xff] }
  0x1d   :  { %v426_v51 = vadd.f32 %v378_v42, %v362_v38  ;;  %v201_v52 = vmul.f32 %v1412_v39, %v1753_v25  ;;  %v237_v53 = vmul.f32 %v1428_v40, %v1757_v26  ;;  %v274_v54 = vmul.f32 %v1444_v41, %v1761_v27  ;;  %v1398_v36 = vld [vmem:[%s2738_s0 + $0x190] sm:$0xff]  ;;  %v1414_v38 = vld [vmem:[%s2738_s0 + $0x220] sm:$0xff] }
  0x1e   :  { %v473_v56 = vadd.f32 %v457_v47, %v345_v61  ;;  %v442_v57 = vadd.f32 %v410_v48, %v394_v43  ;;  %v311_v58 = vmul.f32 %v1460_v46, %v1765_v28  ;;  %v347_v60 = vmul.f32 %v1749_v24, %v1476_v55  ;;  %v1430_v42 = vld [vmem:[%s2738_s0 + $0x191] sm:$0xff]  ;;  %v1446_v43 = vld [vmem:[%s2738_s0 + $0x80] sm:$0xff] }
  0x1f   :  { %v363_v0 = vadd.f32 %v91_v45, %v54_v44  ;;  %v379_v1 = vadd.f32 %v164_v50, %v127_v49  ;;  %v395_v61 = vadd.f32 %v237_v53, %v201_v52  ;;  %v55_v3 = vmul.f32 %v1444_v41, %v1723_v17 }
  0x20   :  { %1564 = vmatmul.mubr.msk.f32.gmra.mxu0 %vm494_vm1, %v473_v56  ;;  %v458_v8 = vadd.f32 %v442_v57, %v426_v51  ;;  %v411_v11 = vadd.f32 %v311_v58, %v274_v54  ;;  %v92_v12 = vmul.f32 %v1460_v46, %v1727_v18  ;;  %v128_v21 = vmul.f32 %v1476_v55, %v1731_v19 }
  0x21   :  { %v427_v22 = vadd.f32 %v379_v1, %v363_v0  ;;  %v165_v23 = vmul.f32 %v1397_v62, %v1735_v20  ;;  %v202_v29 = vmul.f32 %v1413_v63, %v1753_v25  ;;  %v238_v30 = vmul.f32 %v1429_v59, %v1757_v26 }
  0x22   :  { %v474_v31 = vadd.f32 %v458_v8, %v346_v37  ;;  %v443_v32 = vadd.f32 %v411_v11, %v395_v61  ;;  %v275_v33 = vmul.f32 %v1445_v4, %v1761_v27  ;;  %v312_v34 = vmul.f32 %v1461_v6, %v1765_v28 }
  0x23   :  { %v348_v39 = vmul.f32 %v1749_v24, %v1477_v35  ;;  %v364_v37 = vadd.f32 %v92_v12, %v55_v3  ;;  %v380_v40 = vadd.f32 %v165_v23, %v128_v21  ;;  %v396_v41 = vadd.f32 %v238_v30, %v202_v29 }
  0x24   :  { %12 = vsyncpa [#allocation4], 0  ;;  %1566 = vmatprep.mubr.msk.f32.mxu0 %vm494_vm1, %v474_v31  ;;  %v459_v44 = vadd.f32 %v443_v32, %v427_v22  ;;  %v412_v45 = vadd.f32 %v312_v34, %v275_v33  ;;  %v56_v46 = vmul.f32 %v1445_v4, %v1723_v17  ;;  %v93_v47 = vmul.f32 %v1461_v6, %v1727_v18  ;;  %v1462_v48 = vld [vmem:[%s2738_s0 + $0x110] sm:$0xff]  ;;  %v1478_v49 = vld [vmem:[%s2738_s0 + $0x81] sm:$0xff]  ;;  %s1649_s16 = smov [#allocation3]  }
  0x25   :  { %v428_v50 = vadd.f32 %v380_v40, %v364_v37  ;;  %v129_v51 = vmul.f32 %v1477_v35, %v1731_v19  ;;  %v166_v52 = vmul.f32 %v1398_v36, %v1735_v20  ;;  %v203_v53 = vmul.f32 %v1414_v38, %v1753_v25  ;;  %v37_v54 = vld [vmem:[%s2738_s0 + $0x240] sm:$0xff]  ;;  %v1383_v55 = vld [vmem:[%s2738_s0 + $0x2d0] sm:$0xff]  ;;  %s1367_s17 = sshll.u32 %s1649_s16, 4  ;;  %s1368_s17 = int_to_ptr.vmem [resolvable:$true] %s1367_s17 }
  0x26   :  { %v475_v56 = vadd.f32 %v459_v44, %v347_v60  ;;  %v444_v57 = vadd.f32 %v412_v45, %v396_v41  ;;  %v239_v58 = vmul.f32 %v1430_v42, %v1757_v26  ;;  %v276_v62 = vmul.f32 %v1446_v43, %v1761_v27  ;;  %v110_v63 = vld [vmem:[%s2738_s0 + $0x241] sm:$0xff]  ;;  %v1415_v60 = vld [vmem:[%s2738_s0 + $0x3f0] sm:$0xff]  ;;  %s1624_s18 = scalar_lea.vmem %s1368_s17, 128  ;;  %p1629_p1 = scmp.lt.s32.totalorder %s1368_s17, %s1368_s17 }
  0x27   :  { %v1399_v59 = vld [vmem:[%s2738_s0 + $0x360] sm:$0xff]  ;;  %v313_v0 = vmul.f32 %v1462_v48, %v1765_v28  ;;  %v349_v1 = vmul.f32 %v1749_v24, %v1478_v49  ;;  %v365_v61 = vadd.f32 %v93_v47, %v56_v46  ;;  %v381_v3 = vadd.f32 %v166_v52, %v129_v51  ;;  %v1447_v6 = vld [vmem:[%s2738_s0 + $0x250] sm:$0xff]  ;;  %p1625_p0 = scmp.ne.s32.totalorder %s1368_s17, %s1624_s18  ;;  %p1630_p2 = scmp.lt.s32.totalorder %s1624_s18, %s1624_s18 }
  0x28   :  { %v1431_v4 = vld [vmem:[%s2738_s0 + $0x361] sm:$0xff]  ;;  %1567 = vmatmul.mubr.msk.f32.gmra.mxu0 %vm494_vm1, %v475_v56  ;;  %v460_v8 = vadd.f32 %v444_v57, %v428_v50  ;;  %v397_v11 = vadd.f32 %v239_v58, %v203_v53  ;;  %v57_v12 = vmul.f32 %v1723_v17, %v37_v54  ;;  %v94_v21 = vmul.f32 %v1383_v55, %v1727_v18  ;;  %v1479_v36 = vld [vmem:[%s2738_s0 + $0x251] sm:$0xff] }
  0x29   :  { %v1463_v22 = vld [vmem:[%s2738_s0 + $0x2e0] sm:$0xff]  ;;  %v413_v23 = vadd.f32 %v313_v0, %v276_v62  ;;  %v429_v29 = vadd.f32 %v381_v3, %v365_v61  ;;  %v130_v30 = vmul.f32 %v1731_v19, %v110_v63  ;;  %v167_v31 = vmul.f32 %v1399_v59, %v1735_v20  ;;  %v1400_v38 = vld [vmem:[%s2738_s0 + $0x370] sm:$0xff]  ;;  %p1631_p3 = por %p1630_p2, %p1629_p1 }
  0x2a   :  { %v476_v32 = vadd.f32 %v460_v8, %v348_v39  ;;  %v204_v33 = vmul.f32 %v1415_v60, %v1753_v25  ;;  %v240_v34 = vmul.f32 %v1431_v4, %v1757_v26  ;;  %v277_v35 = vmul.f32 %v1447_v6, %v1761_v27  ;;  %v1416_v42 = vld [vmem:[%s2738_s0 + $0x400] sm:$0xff]  ;;  %v1432_v43 = vld [vmem:[%s2738_s0 + $0x371] sm:$0xff] }
  0x2b   :  { %v445_v37 = vadd.f32 %v413_v23, %v397_v11  ;;  %v314_v40 = vmul.f32 %v1463_v22, %v1765_v28  ;;  %v350_v41 = vmul.f32 %v1749_v24, %v1479_v36  ;;  %v366_v39 = vadd.f32 %v94_v21, %v57_v12  ;;  %v1448_v44 = vld [vmem:[%s2738_s0 + $0x260] sm:$0xff]  ;;  %v1464_v49 = vld [vmem:[%s2738_s0 + $0x2f0] sm:$0xff]  ;;  %p1632_p4 = pnand %p1631_p3, %p1625_p0 }
  0x2c   :  { %1569 = vmatprep.mubr.msk.f32.mxu0 %vm494_vm1, %v476_v32  ;;  %v382_v45 = vadd.f32 %v167_v31, %v130_v30  ;;  %v398_v46 = vadd.f32 %v240_v34, %v204_v33  ;;  %v58_v47 = vmul.f32 %v1447_v6, %v1723_v17  ;;  %v95_v48 = vmul.f32 %v1463_v22, %v1727_v18  ;;  %v1480_v58 = vld [vmem:[%s2738_s0 + $0x261] sm:$0xff]  ;;  %v1417_v3 = vld [vmem:[%s2738_s0 + $0x410] sm:$0xff] }
  0x2d   :  { %v461_v50 = vadd.f32 %v445_v37, %v429_v29  ;;  %v414_v51 = vadd.f32 %v314_v40, %v277_v35  ;;  %v131_v52 = vmul.f32 %v1479_v36, %v1731_v19  ;;  %v168_v53 = vmul.f32 %v1400_v38, %v1735_v20  ;;  %v1401_v61 = vld [vmem:[%s2738_s0 + $0x380] sm:$0xff]  ;;  %v1449_v11 = vld [vmem:[%s2738_s0 + $0x270] sm:$0xff] }
  0x2e   :  { %v430_v54 = vadd.f32 %v382_v45, %v366_v39  ;;  %v205_v55 = vmul.f32 %v1416_v42, %v1753_v25  ;;  %v241_v56 = vmul.f32 %v1432_v43, %v1757_v26  ;;  %v278_v57 = vmul.f32 %v1448_v44, %v1761_v27  ;;  %v1433_v60 = vld [vmem:[%s2738_s0 + $0x381] sm:$0xff]  ;;  %v1481_v37 = vld [vmem:[%s2738_s0 + $0x271] sm:$0xff] }
  0x2f   :  { %v477_v62 = vadd.f32 %v461_v50, %v349_v1  ;;  %v446_v63 = vadd.f32 %v414_v51, %v398_v46  ;;  %v315_v59 = vmul.f32 %v1464_v49, %v1765_v28  ;;  %v351_v0 = vmul.f32 %v1749_v24, %v1480_v58  ;;  %v1465_v12 = vld [vmem:[%s2738_s0 + $0x300] sm:$0xff]  ;;  %v1402_v40 = vld [vmem:[%s2738_s0 + $0x390] sm:$0xff] }
  0x30   :  { %v367_v4 = vadd.f32 %v95_v48, %v58_v47  ;;  %v383_v6 = vadd.f32 %v168_v53, %v131_v52  ;;  %v399_v1 = vadd.f32 %v241_v56, %v205_v55  ;;  %v59_v8 = vmul.f32 %v1448_v44, %v1723_v17  ;;  %v1418_v39 = vld [vmem:[%s2738_s0 + $0x420] sm:$0xff]  ;;  %v1434_v45 = vld [vmem:[%s2738_s0 + $0x391] sm:$0xff] }
  0x31   :  { %1570 = vmatmul.mubr.msk.f32.gmra.mxu0 %vm494_vm1, %v477_v62  ;;  %v462_v21 = vadd.f32 %v446_v63, %v430_v54  ;;  %v415_v22 = vadd.f32 %v315_v59, %v278_v57  ;;  %v96_v23 = vmul.f32 %v1464_v49, %v1727_v18  ;;  %v132_v29 = vmul.f32 %v1480_v58, %v1731_v19  ;;  %v1450_v46 = vld [vmem:[%s2738_s0 + $0x280] sm:$0xff]  ;;  %v1466_v51 = vld [vmem:[%s2738_s0 + $0x310] sm:$0xff] }
  0x32   :  { %v431_v30 = vadd.f32 %v383_v6, %v367_v4  ;;  %v169_v31 = vmul.f32 %v1401_v61, %v1735_v20  ;;  %v206_v32 = vmul.f32 %v1417_v3, %v1753_v25  ;;  %v242_v33 = vmul.f32 %v1433_v60, %v1757_v26  ;;  %v1482_v63 = vld [vmem:[%s2738_s0 + $0x281] sm:$0xff] }
  0x33   :  { %v478_v34 = vadd.f32 %v462_v21, %v350_v41  ;;  %v447_v35 = vadd.f32 %v415_v22, %v399_v1  ;;  %v279_v36 = vmul.f32 %v1449_v11, %v1761_v27  ;;  %v316_v38 = vmul.f32 %v1465_v12, %v1765_v28  ;;  %v1403_v59 = vld [vmem:[%s2738_s0 + $0x3a0] sm:$0xff]  ;;  %v1451_v1 = vld [vmem:[%s2738_s0 + $0x290] sm:$0xff] }
  0x34   :  { %v352_v42 = vmul.f32 %v1749_v24, %v1481_v37  ;;  %v368_v41 = vadd.f32 %v96_v23, %v59_v8  ;;  %v384_v43 = vadd.f32 %v169_v31, %v132_v29  ;;  %v400_v44 = vadd.f32 %v242_v33, %v206_v32  ;;  %v1435_v6 = vld [vmem:[%s2738_s0 + $0x3a1] sm:$0xff] }
  0x35   :  { %1572 = vmatprep.mubr.msk.f32.mxu0 %vm494_vm1, %v478_v34  ;;  %v463_v47 = vadd.f32 %v447_v35, %v431_v30  ;;  %v416_v48 = vadd.f32 %v316_v38, %v279_v36  ;;  %v60_v49 = vmul.f32 %v1449_v11, %v1723_v17  ;;  %v97_v50 = vmul.f32 %v1465_v12, %v1727_v18  ;;  %v1467_v22 = vld [vmem:[%s2738_s0 + $0x320] sm:$0xff]  ;;  %v1483_v36 = vld [vmem:[%s2738_s0 + $0x291] sm:$0xff] }
  0x36   :  { %v432_v52 = vadd.f32 %v384_v43, %v368_v41  ;;  %v133_v53 = vmul.f32 %v1481_v37, %v1731_v19  ;;  %v170_v54 = vmul.f32 %v1402_v40, %v1735_v20  ;;  %v207_v55 = vmul.f32 %v1418_v39, %v1753_v25  ;;  %v1404_v38 = vld [vmem:[%s2738_s0 + $0x3b0] sm:$0xff]  ;;  %v1420_v41 = vld [vmem:[%s2738_s0 + $0x440] sm:$0xff] }
  0x37   :  { %v479_v56 = vadd.f32 %v463_v47, %v351_v0  ;;  %v448_v57 = vadd.f32 %v416_v48, %v400_v44  ;;  %v243_v58 = vmul.f32 %v1434_v45, %v1757_v26  ;;  %v280_v62 = vmul.f32 %v1450_v46, %v1761_v27  ;;  %v1419_v0 = vld [vmem:[%s2738_s0 + $0x430] sm:$0xff]  ;;  %v1452_v44 = vld [vmem:[%s2738_s0 + $0x2a0] sm:$0xff] }
  0x38   :  { %v317_v61 = vmul.f32 %v1466_v51, %v1765_v28  ;;  %v353_v3 = vmul.f32 %v1749_v24, %v1482_v63  ;;  %v369_v60 = vadd.f32 %v97_v50, %v60_v49  ;;  %v385_v4 = vadd.f32 %v170_v54, %v133_v53  ;;  %v1436_v43 = vld [vmem:[%s2738_s0 + $0x3b1] sm:$0xff] }
  0x39   :  { %1573 = vmatmul.mubr.msk.f32.gmra.mxu0 %vm494_vm1, %v479_v56  ;;  %v464_v8 = vadd.f32 %v448_v57, %v432_v52  ;;  %v401_v11 = vadd.f32 %v243_v58, %v207_v55  ;;  %v61_v12 = vmul.f32 %v1450_v46, %v1723_v17  ;;  %v98_v21 = vmul.f32 %v1466_v51, %v1727_v18  ;;  %v1468_v49 = vld [vmem:[%s2738_s0 + $0x330] sm:$0xff]  ;;  %v1484_v58 = vld [vmem:[%s2738_s0 + $0x2a1] sm:$0xff] }
  0x3a   :  { %v417_v23 = vadd.f32 %v317_v61, %v280_v62  ;;  %v433_v29 = vadd.f32 %v385_v4, %v369_v60  ;;  %v134_v30 = vmul.f32 %v1482_v63, %v1731_v19  ;;  %v171_v31 = vmul.f32 %v1403_v59, %v1735_v20  ;;  %v1405_v60 = vld [vmem:[%s2738_s0 + $0x3c0] sm:$0xff]  ;;  %v1421_v4 = vld [vmem:[%s2738_s0 + $0x450] sm:$0xff] }
  0x3b   :  { %v480_v32 = vadd.f32 %v464_v8, %v352_v42  ;;  %v208_v33 = vmul.f32 %v1419_v0, %v1753_v25  ;;  %v244_v34 = vmul.f32 %v1435_v6, %v1757_v26  ;;  %v281_v35 = vmul.f32 %v1451_v1, %v1761_v27  ;;  %v1437_v0 = vld [vmem:[%s2738_s0 + $0x3c1] sm:$0xff] }
  0x3c   :  { %v449_v37 = vadd.f32 %v417_v23, %v401_v11  ;;  %v318_v40 = vmul.f32 %v1467_v22, %v1765_v28  ;;  %v354_v39 = vmul.f32 %v1749_v24, %v1483_v36  ;;  %v370_v42 = vadd.f32 %v98_v21, %v61_v12  ;;  %v1453_v11 = vld [vmem:[%s2738_s0 + $0x2b0] sm:$0xff]  ;;  %v1469_v12 = vld [vmem:[%s2738_s0 + $0x340] sm:$0xff] }
  0x3d   :  { %1575 = vmatprep.mubr.msk.f32.mxu0 %vm494_vm1, %v480_v32  ;;  %v386_v45 = vadd.f32 %v171_v31, %v134_v30  ;;  %v402_v46 = vadd.f32 %v244_v34, %v208_v33  ;;  %v62_v47 = vmul.f32 %v1451_v1, %v1723_v17  ;;  %v99_v48 = vmul.f32 %v1467_v22, %v1727_v18 }
  0x3e   :  { %v465_v50 = vadd.f32 %v449_v37, %v433_v29  ;;  %v418_v51 = vadd.f32 %v318_v40, %v281_v35  ;;  %v135_v52 = vmul.f32 %v1483_v36, %v1731_v19  ;;  %v172_v53 = vmul.f32 %v1404_v38, %v1735_v20  ;;  %v1485_v37 = vld [vmem:[%s2738_s0 + $0x2b1] sm:$0xff] }
  0x3f   :  { %v434_v54 = vadd.f32 %v386_v45, %v370_v42  ;;  %v209_v55 = vmul.f32 %v1420_v41, %v1753_v25  ;;  %v245_v56 = vmul.f32 %v1436_v43, %v1757_v26  ;;  %v282_v57 = vmul.f32 %v1452_v44, %v1761_v27  ;;  %v1406_v40 = vld [vmem:[%s2738_s0 + $0x3d0] sm:$0xff]  ;;  %v1422_v42 = vld [vmem:[%s2738_s0 + $0x460] sm:$0xff] }
  0x40   :  { %v481_v62 = vadd.f32 %v465_v50, %v353_v3  ;;  %v450_v63 = vadd.f32 %v418_v51, %v402_v46  ;;  %v319_v59 = vmul.f32 %v1468_v49, %v1765_v28  ;;  %v355_v61 = vmul.f32 %v1749_v24, %v1484_v58  ;;  %v1438_v45 = vld [vmem:[%s2738_s0 + $0x3d1] sm:$0xff]  ;;  %v1454_v46 = vld [vmem:[%s2738_s0 + $0x2c0] sm:$0xff] }
  0x41   :  { %v371_v6 = vadd.f32 %v99_v48, %v62_v47  ;;  %v387_v1 = vadd.f32 %v172_v53, %v135_v52  ;;  %v403_v3 = vadd.f32 %v245_v56, %v209_v55  ;;  %v63_v8 = vmul.f32 %v1452_v44, %v1723_v17  ;;  %v1470_v51 = vld [vmem:[%s2738_s0 + $0x350] sm:$0xff] }
  0x42   :  { %1576 = vmatmul.mubr.msk.f32.gmra.mxu0 %vm494_vm1, %v481_v62  ;;  %v466_v21 = vadd.f32 %v450_v63, %v434_v54  ;;  %v419_v22 = vadd.f32 %v319_v59, %v282_v57  ;;  %v100_v23 = vmul.f32 %v1468_v49, %v1727_v18  ;;  %v136_v29 = vmul.f32 %v1484_v58, %v1731_v19 }
  0x43   :  { %v435_v30 = vadd.f32 %v387_v1, %v371_v6  ;;  %v173_v31 = vmul.f32 %v1405_v60, %v1735_v20  ;;  %v210_v32 = vmul.f32 %v1421_v4, %v1753_v25  ;;  %v246_v33 = vmul.f32 %v1437_v0, %v1757_v26 }
  0x44   :  { %v482_v34 = vadd.f32 %v466_v21, %v354_v39  ;;  %v451_v35 = vadd.f32 %v419_v22, %v403_v3  ;;  %v283_v36 = vmul.f32 %v1453_v11, %v1761_v27  ;;  %v320_v38 = vmul.f32 %v1469_v12, %v1765_v28 }
  0x45   :  { %v356_v41 = vmul.f32 %v1749_v24, %v1485_v37  ;;  %v372_v39 = vadd.f32 %v100_v23, %v63_v8  ;;  %v388_v43 = vadd.f32 %v173_v31, %v136_v29  ;;  %v404_v44 = vadd.f32 %v246_v33, %v210_v32 }
  0x46   :  { %1578 = vmatprep.mubr.msk.f32.mxu0 %vm494_vm1, %v482_v34  ;;  %v467_v47 = vadd.f32 %v451_v35, %v435_v30  ;;  %v420_v48 = vadd.f32 %v320_v38, %v283_v36  ;;  %v64_v49 = vmul.f32 %v1453_v11, %v1723_v17  ;;  %v101_v50 = vmul.f32 %v1469_v12, %v1727_v18  ;;  %v1232_v38 = vld [vmem:[%s2744_s6] sm:$0xff] }
  0x47   :  { %v436_v52 = vadd.f32 %v388_v43, %v372_v39  ;;  %v137_v53 = vmul.f32 %v1485_v37, %v1731_v19  ;;  %v174_v54 = vmul.f32 %v1406_v40, %v1735_v20  ;;  %v211_v55 = vmul.f32 %v1422_v42, %v1753_v25  ;;  %v1486_v19 = vld [vmem:[%s2738_s0 + $0x2c1] sm:$0xff] }
  0x48   :  { %v483_v56 = vadd.f32 %v467_v47, %v355_v61  ;;  %v452_v57 = vadd.f32 %v420_v48, %v404_v44  ;;  %v247_v58 = vmul.f32 %v1438_v45, %v1757_v26  ;;  %v284_v62 = vmul.f32 %v1454_v46, %v1761_v27 }
  0x49   :  { %v321_v17 = vmul.f32 %v1470_v51, %v1765_v28  ;;  %v373_v18 = vadd.f32 %v101_v50, %v64_v49  ;;  %v389_v63 = vadd.f32 %v174_v54, %v137_v53  ;;  %v357_v4 = vmul.f32 %v1749_v24, %v1486_v19  ;;  %v2309_v24 = vld [vmem:[%s2741_s3] ss:$0 sm:$0xff] }
  0x4a   :  { %1579 = vmatmul.mubr.msk.f32.gmra.mxu0 %vm494_vm1, %v483_v56  ;;  %v468_v59 = vadd.f32 %v452_v57, %v436_v52  ;;  %v405_v20 = vadd.f32 %v247_v58, %v211_v55  ;;  %vm718_vm2 = vcmask 24576   ;;  %v2746_v0 = vmov 0.0   ;;  %v776_v19 = vld [vmem:[%s2742_s4] sm:$0xff] }
  0x4b   :  { %v421_v60 = vadd.f32 %v321_v17, %v284_v62  ;;  %v437_v25 = vadd.f32 %v389_v63, %v373_v18  ;;  %1584 = vmatprep.subr.mxu1 %v2746_v0  ;;  %708 = vst.msk [vmem:[#allocation2] sm:$0xff] %vm494_vm1, %v2746_v0  ;;  %711 = vst.msk [vmem:[#allocation2 + $0xa0] sm:$0xff] %vm494_vm1, %v2746_v0  ;;  %vm709_vm3 = vcmask 25600   ;;  %vm1647_vm4 = vmmov 0  }
  0x4c   :  { %v484_v61 = vadd.f32 %v468_v59, %v356_v41  ;;  %714 = vst.msk [vmem:[#allocation2 + $0x90] sm:$0xff] %vm494_vm1, %v2746_v0  ;;  %716 = vst.msk [vmem:[#allocation2 + $0x130] sm:$0xff] %vm494_vm1, %v2746_v0  ;;  %1616 = vmatprep.mubr.msk.f32.mxu1 %vm1647_vm4, %v2746_v0  ;;  %v1648_v37 = vmov 0  }
  0x4d   :  { %v453_v26 = vadd.f32 %v421_v60, %v405_v20  ;;  %736 = vst.msk [vmem:[#allocation2 + $0x110] sm:$0x1] %vm718_vm2, %v2746_v0  ;;  %737 = vst.msk [vmem:[#allocation2 + $0x120] sm:$0x1] %vm718_vm2, %v2746_v0  ;;  %1623 = vset.pattern.permute.xlu0 %v1648_v37 }
  0x4e   :  { %1581 = vmatprep.mubr.msk.f32.mxu0 %vm494_vm1, %v484_v61  ;;  %756 = vst.msk [vmem:[#allocation2 + $0x119] sm:$0x1] %vm718_vm2, %v2746_v0  ;;  %757 = vst.msk [vmem:[#allocation2 + $0x129] sm:$0x1] %vm718_vm2, %v2746_v0  ;;  %1235 = vperm.xlu0 %1623, %v1232_v38  }
  0x4f   :  { %v469_v27 = vadd.f32 %v453_v26, %v437_v25  ;;  %720 = vst.msk [vmem:[#allocation2 + $0x10] sm:$0x1] %vm718_vm2, %v2746_v0  ;;  %721 = vst.msk [vmem:[#allocation2 + $0x20] sm:$0x1] %vm718_vm2, %v2746_v0  ;;  %v2353_v26 = vrot.slane %v776_v19, %v304_v16 }
  0x50   :  { %722 = vst.msk [vmem:[#allocation2 + $0x30] sm:$0x1] %vm718_vm2, %v2746_v0  ;;  %723 = vst.msk [vmem:[#allocation2 + $0x40] sm:$0x1] %vm718_vm2, %v2746_v0 }
  0x51   :  { %v485_v28 = vadd.f32 %v469_v27, %v357_v4  ;;  %724 = vst.msk [vmem:[#allocation2 + $0x50] sm:$0x1] %vm718_vm2, %v2746_v0  ;;  %725 = vst.msk [vmem:[#allocation2 + $0x60] sm:$0x1] %vm718_vm2, %v2746_v0  ;;  %v2349_v4 = vrot.slane %v776_v19, %v267_v15 }
  0x52   :  { %726 = vst.msk [vmem:[#allocation2 + $0x70] sm:$0x1] %vm718_vm2, %v2746_v0  ;;  %727 = vst.msk [vmem:[#allocation2 + $0x80] sm:$0x1] %vm718_vm2, %v2746_v0 }
  0x53   :  { %1582 = vmatmul.mubr.msk.f32.gmra.mxu0 %vm494_vm1, %v485_v28  ;;  %730 = vst.msk [vmem:[#allocation2 + $0xb0] sm:$0x1] %vm718_vm2, %v2746_v0  ;;  %731 = vst.msk [vmem:[#allocation2 + $0xc0] sm:$0x1] %vm718_vm2, %v2746_v0 }
  0x54   :  { %732 = vst.msk [vmem:[#allocation2 + $0xd0] sm:$0x1] %vm718_vm2, %v2746_v0  ;;  %733 = vst.msk [vmem:[#allocation2 + $0xe0] sm:$0x1] %vm718_vm2, %v2746_v0 }
  0x55   :  { %734 = vst.msk [vmem:[#allocation2 + $0xf0] sm:$0x1] %vm718_vm2, %v2746_v0  ;;  %735 = vst.msk [vmem:[#allocation2 + $0x100] sm:$0x1] %vm718_vm2, %v2746_v0 }
  0x56   :  { %740 = vst.msk [vmem:[#allocation2 + $0x19] sm:$0x1] %vm718_vm2, %v2746_v0  ;;  %741 = vst.msk [vmem:[#allocation2 + $0x29] sm:$0x1] %vm718_vm2, %v2746_v0 }
  0x57   :  { %742 = vst.msk [vmem:[#allocation2 + $0x39] sm:$0x1] %vm718_vm2, %v2746_v0  ;;  %743 = vst.msk [vmem:[#allocation2 + $0x49] sm:$0x1] %vm718_vm2, %v2746_v0 }
  0x58   :  { %744 = vst.msk [vmem:[#allocation2 + $0x59] sm:$0x1] %vm718_vm2, %v2746_v0  ;;  %745 = vst.msk [vmem:[#allocation2 + $0x69] sm:$0x1] %vm718_vm2, %v2746_v0 }
  0x59   :  { %746 = vst.msk [vmem:[#allocation2 + $0x79] sm:$0x1] %vm718_vm2, %v2746_v0  ;;  %747 = vst.msk [vmem:[#allocation2 + $0x89] sm:$0x1] %vm718_vm2, %v2746_v0 }
  0x5a   :  { %750 = vst.msk [vmem:[#allocation2 + $0xb9] sm:$0x1] %vm718_vm2, %v2746_v0  ;;  %751 = vst.msk [vmem:[#allocation2 + $0xc9] sm:$0x1] %vm718_vm2, %v2746_v0 }
  0x5b   :  { %752 = vst.msk [vmem:[#allocation2 + $0xd9] sm:$0x1] %vm718_vm2, %v2746_v0  ;;  %753 = vst.msk [vmem:[#allocation2 + $0xe9] sm:$0x1] %vm718_vm2, %v2746_v0 }
  0x5c   :  { %754 = vst.msk [vmem:[#allocation2 + $0xf9] sm:$0x1] %vm718_vm2, %v2746_v0  ;;  %755 = vst.msk [vmem:[#allocation2 + $0x109] sm:$0x1] %vm718_vm2, %v2746_v0 }
  0x5d   :  { %710 = vst.msk [vmem:[#allocation2 + $0x8] sm:$0x3] %vm709_vm3, %v2746_v0  ;;  %712 = vst.msk [vmem:[#allocation2 + $0xa8] sm:$0x3] %vm709_vm3, %v2746_v0 }
  0x5e   :  { %717 = vst.msk [vmem:[#allocation2 + $0x138] sm:$0x3] %vm709_vm3, %v2746_v0  ;;  %715 = vst.msk [vmem:[#allocation2 + $0x98] sm:$0x3] %vm709_vm3, %v2746_v0 }
  0x5f   :  { %738 = vst.msk [vmem:[#allocation2 + $0x130] sm:$0x1] %vm718_vm2, %v2746_v0  ;;  %719 = vst.msk [vmem:[#allocation2] sm:$0x1] %vm718_vm2, %v2746_v0 }
  0x60   :  { %728 = vst.msk [vmem:[#allocation2 + $0x90] sm:$0x1] %vm718_vm2, %v2746_v0  ;;  %729 = vst.msk [vmem:[#allocation2 + $0xa0] sm:$0x1] %vm718_vm2, %v2746_v0 }
  0x61   :  { %758 = vst.msk [vmem:[#allocation2 + $0x139] sm:$0x1] %vm718_vm2, %v2746_v0  ;;  %739 = vst.msk [vmem:[#allocation2 + $0x9] sm:$0x1] %vm718_vm2, %v2746_v0 }
  0x62   :  { %749 = vst.msk [vmem:[#allocation2 + $0xa9] sm:$0x1] %vm718_vm2, %v2746_v0  ;;  %748 = vst.msk [vmem:[#allocation2 + $0x99] sm:$0x1] %vm718_vm2, %v2746_v0 }
  0x64   :  { %v822_v28 = vld [vmem:[#allocation2 + $0xa1] sm:$0xff] }
  0x65   :  { %v1038_v25 = vld [vmem:[#allocation2 + $0x91] sm:$0xff]  ;;  %v814_v37 = vld [vmem:[#allocation2 + $0x1] sm:$0xff] }
  0x66   :  { %v1058_v16 = vmul.f32 %v2353_v26, %v1038_v25 }
  0x67   :  { %v1002_v60 = vld [vmem:[#allocation2 + $0x90] sm:$0xff]  ;;  %v786_v27 = vld [vmem:[#allocation2 + $0xa0] sm:$0xff] }
  0x68   :  { %v1082_v38 = vld [vmem:[#allocation2 + $0x132] sm:$0xff] }
  0xd7   :  { %v1562_v6 = vpop.f32.mrf.mxu0 }
  0xd8   :  { %v619_v1 = vadd.f32 %v1562_v6, %v2309_v24 }
  0xd9   :  { %v613_v3 = vpop.f32.mrf.mxu0 }
  0xda   :  { %v693_v8 = vmax.f32 %v619_v1, 0.0  ;;  %v614_v11 = vadd.f32 %v2309_v24, %v613_v3  ;;  %v2357_v1 = vrot.slane %v776_v19, %v47_v5  ;;  %v2361_v3 = vrot.slane %v776_v19, %v84_v7  ;;  %v1074_v5 = vld [vmem:[#allocation2 + $0x92] sm:$0xff]  ;;  %v2372_v7 = vld [vmem:[%s2742_s4 + $0x8] ss:$0 sm:$0xff] }
  0xdc   :  { %761 = vst.msk [vmem:[#allocation2 + $0x21] sm:$0xff] %vm494_vm1, %v693_v8  ;;  %v692_v12 = vmax.f32 %v614_v11, 0.0  ;;  %v1010_v8 = vld [vmem:[#allocation2 + $0x130] sm:$0xff] }
  0xdd   :  { %v1046_v11 = vld [vmem:[#allocation2 + $0x131] sm:$0xff] }
  0xde   :  { %760 = vst.msk [vmem:[#allocation2 + $0x11] sm:$0xff] %vm494_vm1, %v692_v12 }
  0xe0   :  { %v1565_v21 = vpop.f32.mrf.mxu0 }
  0xe1   :  { %v629_v22 = vadd.f32 %v1565_v21, %v2309_v24  ;;  %v1022_v21 = vmul.f32 %v2349_v4, %v1002_v60 }
  0xe2   :  { %v623_v23 = vpop.f32.mrf.mxu0 }
  0xe3   :  { %v695_v29 = vmax.f32 %v629_v22, 0.0  ;;  %v624_v30 = vadd.f32 %v2309_v24, %v623_v23  ;;  %v806_v22 = vmul.f32 %v2357_v1, %v786_v27  ;;  %v842_v23 = vmul.f32 %v2361_v3, %v822_v28 }
  0xe5   :  { %763 = vst.msk [vmem:[#allocation2 + $0x41] sm:$0xff] %vm494_vm1, %v695_v29  ;;  %v694_v31 = vmax.f32 %v624_v30, 0.0  ;;  %v858_v29 = vld [vmem:[#allocation2 + $0xa2] sm:$0xff] }
  0xe7   :  { %762 = vst.msk [vmem:[#allocation2 + $0x31] sm:$0xff] %vm494_vm1, %v694_v31  ;;  %v1030_v31 = vmul.f32 %v2349_v4, %v1010_v8 }
  0xe8   :  { %v1568_v32 = vpop.f32.mrf.mxu0 }
  0xe9   :  { %v639_v33 = vadd.f32 %v1568_v32, %v2309_v24  ;;  %v1066_v32 = vmul.f32 %v2353_v26, %v1046_v11 }
  0xea   :  { %v633_v34 = vpop.f32.mrf.mxu0 }
  0xeb   :  { %v697_v35 = vmax.f32 %v639_v33, 0.0  ;;  %v634_v36 = vadd.f32 %v2309_v24, %v633_v34 }
  0xed   :  { %765 = vst.msk [vmem:[#allocation2 + $0x61] sm:$0xff] %vm494_vm1, %v697_v35  ;;  %v696_v40 = vmax.f32 %v634_v36, 0.0  ;;  %v778_v35 = vld [vmem:[#allocation2] sm:$0xff]  ;;  %v2386_v36 = vrot.slane %v776_v19, %v157_v10 }
  0xef   :  { %764 = vst.msk [vmem:[#allocation2 + $0x51] sm:$0xff] %vm494_vm1, %v696_v40  ;;  %v850_v40 = vld [vmem:[#allocation2 + $0x2] sm:$0xff] }
  0xf1   :  { %v1571_v42 = vpop.f32.mrf.mxu0 }
  0xf2   :  { %v649_v41 = vadd.f32 %v1571_v42, %v2309_v24  ;;  %v2395_v42 = vrot.slane %v776_v19, %v230_v14 }
  0xf3   :  { %v643_v39 = vpop.f32.mrf.mxu0 }
  0xf4   :  { %v699_v43 = vmax.f32 %v649_v41, 0.0  ;;  %v644_v44 = vadd.f32 %v2309_v24, %v643_v39 }
  0xf6   :  { %767 = vst.msk [vmem:[#allocation2 + $0x81] sm:$0xff] %vm494_vm1, %v699_v43  ;;  %v698_v45 = vmax.f32 %v644_v44, 0.0  ;;  %v2406_v44 = vadd.f32 %v1058_v16, %v1022_v21 }
  0xf8   :  { %766 = vst.msk [vmem:[#allocation2 + $0x71] sm:$0xff] %vm494_vm1, %v698_v45  ;;  %2750 = vst [vmem:[#allocation7_spill] sm:$0xff] %v2406_v44 }
  0xf9   :  { %v1574_v46 = vpop.f32.mrf.mxu0 }
  0xfa   :  { %v659_v47 = vadd.f32 %v1574_v46, %v2309_v24 }
  0xfb   :  { %v653_v48 = vpop.f32.mrf.mxu0 }
  0xfc   :  { %v701_v49 = vmax.f32 %v659_v47, 0.0  ;;  %v654_v50 = vadd.f32 %v2309_v24, %v653_v48  ;;  %v2418_v47 = vadd.f32 %v842_v23, %v806_v22  ;;  %v2421_v48 = vmul.f32 %v2372_v7, %v1074_v5 }
  0xfe   :  { %769 = vst.msk [vmem:[#allocation2 + $0xc1] sm:$0xff] %vm494_vm1, %v701_v49  ;;  %v700_v51 = vmax.f32 %v654_v50, 0.0  ;;  %2751 = vst [vmem:[#allocation8_spill] sm:$0xff] %v2418_v47  ;;  %v1166_v49 = vadd.f32 %v1066_v32, %v1030_v31 }
  0xff   :  { %2752 = vst [vmem:[#allocation9_spill] sm:$0xff] %v2421_v48 }
 0x100   :  { %768 = vst.msk [vmem:[#allocation2 + $0xb1] sm:$0xff] %vm494_vm1, %v700_v51  ;;  %v2426_v51 = vmul.f32 %v2357_v1, %v778_v35 }
 0x102   :  { %v1577_v52 = vpop.f32.mrf.mxu0  ;;  %2753 = vst [vmem:[#allocation10_spill] sm:$0xff] %v2426_v51 }
 0x103   :  { %v669_v53 = vadd.f32 %v1577_v52, %v2309_v24  ;;  %v2429_v52 = vmul.f32 %v2361_v3, %v814_v37 }
 0x104   :  { %v663_v54 = vpop.f32.mrf.mxu0 }
 0x105   :  { %v703_v55 = vmax.f32 %v669_v53, 0.0  ;;  %v664_v56 = vadd.f32 %v2309_v24, %v663_v54  ;;  %v2399_v39 = vld [vmem:[#allocation2 + $0xc0] sm:$0xff]  ;;  %2754 = vst [vmem:[#allocation11_spill] sm:$0xff] %v2429_v52  ;;  %v2435_v54 = vmul.f32 %v2372_v7, %v1082_v38 }
 0x106   :  { %v2401_v43 = vld [vmem:[#allocation2 + $0xc1] sm:$0xff] }
 0x107   :  { %771 = vst.msk [vmem:[#allocation2 + $0xe1] sm:$0xff] %vm494_vm1, %v703_v55  ;;  %v702_v57 = vmax.f32 %v664_v56, 0.0 }
 0x109   :  { %770 = vst.msk [vmem:[#allocation2 + $0xd1] sm:$0xff] %vm494_vm1, %v702_v57 }
 0x10a   :  { %v1580_v58 = vpop.f32.mrf.mxu0 }
 0x10b   :  { %v679_v62 = vadd.f32 %v1580_v58, %v2309_v24  ;;  %v2447_v58 = vmul.f32 %v2357_v1, %v2399_v39 }
 0x10c   :  { %v673_v17 = vpop.f32.mrf.mxu0 }
 0x10d   :  { %v705_v18 = vmax.f32 %v679_v62, 0.0  ;;  %v674_v63 = vadd.f32 %v2309_v24, %v673_v17  ;;  %v2451_v62 = vmul.f32 %v2361_v3, %v2401_v43 }
 0x10e   :  { %v2397_v41 = vld [vmem:[#allocation2 + $0xe0] sm:$0xff] }
 0x10f   :  { %773 = vst.msk [vmem:[#allocation2 + $0x101] sm:$0xff] %vm494_vm1, %v705_v18  ;;  %v704_v59 = vmax.f32 %v674_v63, 0.0  ;;  %v2414_v14 = vld [vmem:[#allocation2 + $0xe1] sm:$0xff]  ;;  %v2443_v57 = vmul.f32 %v2357_v1, %v2397_v41 }
 0x110   :  { %v2416_v46 = vld [vmem:[#allocation2 + $0xe2] sm:$0xff]  ;;  %v846_v18 = vmul.f32 %v2361_v3, %v2414_v14 }
 0x111   :  { %772 = vst.msk [vmem:[#allocation2 + $0xf1] sm:$0xff] %vm494_vm1, %v704_v59  ;;  %v2461_v59 = vmul.f32 %v2386_v36, %v2397_v41 }
 0x113   :  { %v1583_v20 = vpop.f32.mrf.mxu0 }
 0x114   :  { %v689_v61 = vadd.f32 %v1583_v20, %v2309_v24 }
 0x115   :  { %v683_v6 = vpop.f32.mrf.mxu0 }
 0x116   :  { %v707_v12 = vmax.f32 %v689_v61, 0.0  ;;  %v684_v15 = vadd.f32 %v2309_v24, %v683_v6  ;;  %v2376_v24 = vrot.slane %v776_v19, %v120_v9  ;;  %v2380_v33 = vld [vmem:[#allocation2 + $0x100] sm:$0xff]  ;;  %v2391_v9 = vrot.slane %v776_v19, %v194_v13 }
 0x117   :  { %v2382_v34 = vld [vmem:[#allocation2 + $0x101] sm:$0xff]  ;;  %v812_v45 = vmul.f32 %v2357_v1, %v2380_v33  ;;  %v919_v44 = vmul.f32 %v2386_v36, %v2380_v33  ;;  %v1027_v47 = vmul.f32 %v2349_v4, %v2380_v33 }
 0x118   :  { %775 = vst.msk [vmem:[#allocation2 + $0x121] sm:$0xff] %vm494_vm1, %v707_v12  ;;  %v706_v30 = vmax.f32 %v684_v15, 0.0  ;;  %v2404_v10 = vmul.f32 %v2376_v24, %v858_v29  ;;  %v848_v13 = vmul.f32 %v2361_v3, %v2382_v34  ;;  %v2412_v2 = vld [vmem:[#allocation2 + $0x102] sm:$0xff]  ;;  %v2423_v50 = vld [vmem:[#allocation2 + $0xf0] sm:$0xff]  ;;  %v2432_v53 = vmul.f32 %v2376_v24, %v850_v40 }
 0x119   :  { %v2437_v55 = vld [vmem:[#allocation2 + $0xf1] sm:$0xff]  ;;  %v884_v17 = vmul.f32 %v2376_v24, %v2412_v2  ;;  %v882_v63 = vmul.f32 %v2376_v24, %v2416_v46  ;;  %v811_v61 = vmul.f32 %v2357_v1, %v2423_v50  ;;  %v955_v27 = vmul.f32 %v2391_v9, %v2382_v34 }
 0x11a   :  { %774 = vst.msk [vmem:[#allocation2 + $0x111] sm:$0xff] %vm494_vm1, %v706_v30  ;;  %2749 = vst [vmem:[#allocation6_spill] sm:$0xff] %v2404_v10  ;;  %v2439_v56 = vld [vmem:[#allocation2 + $0xf2] sm:$0xff]  ;;  %v1117_v25 = vadd.f32 %v848_v13, %v812_v45  ;;  %v991_v28 = vmul.f32 %v2395_v42, %v2412_v2  ;;  %v847_v11 = vmul.f32 %v2361_v3, %v2437_v55 }
 0x11b   :  { %2755 = vst [vmem:[#allocation12_spill] sm:$0xff] %v2432_v53  ;;  %2756 = vst [vmem:[#allocation13_spill] sm:$0xff] %v2439_v56  ;;  %v883_v12 = vmul.f32 %v2376_v24, %v2439_v56  ;;  %v918_v5 = vmul.f32 %v2386_v36, %v2423_v50  ;;  %v954_v45 = vmul.f32 %v2391_v9, %v2437_v55 }
 0x11c   :  { %v990_v0 = vmul.f32 %v2395_v42, %v2439_v56  ;;  %v1116_v10 = vadd.f32 %v847_v11, %v811_v61  ;;  %v1026_v33 = vmul.f32 %v2349_v4, %v2423_v50 }
 0x11d   :  { %v1132_v56 = vadd.f32 %v919_v44, %v883_v12  ;;  %v1062_v44 = vmul.f32 %v2353_v26, %v2437_v55  ;;  %v2757_v55 = vmov 0.0  }
 0x11f   :  { %v901_v19 = vld [vmem:[#allocation2 + $0x120] sm:$0xff] }
 0x120   :  { %v937_v20 = vld [vmem:[#allocation2 + $0x121] sm:$0xff]  ;;  %v921_v22 = vmul.f32 %v2386_v36, %v901_v19  ;;  %v1029_v23 = vmul.f32 %v2349_v4, %v901_v19 }
 0x121   :  { %v973_v60 = vld [vmem:[#allocation2 + $0x122] sm:$0xff]  ;;  %v957_v6 = vmul.f32 %v2391_v9, %v937_v20  ;;  %v793_v15 = vld [vmem:[#allocation2 + $0x110] sm:$0xff]  ;;  %v1065_v29 = vmul.f32 %v2353_v26, %v937_v20 }
 0x122   :  { %v993_v8 = vmul.f32 %v2395_v42, %v973_v60  ;;  %v829_v21 = vld [vmem:[#allocation2 + $0x111] sm:$0xff]  ;;  %v813_v30 = vmul.f32 %v2357_v1, %v793_v15  ;;  %v920_v38 = vmul.f32 %v2386_v36, %v793_v15  ;;  %v1028_v20 = vmul.f32 %v2349_v4, %v793_v15 }
 0x123   :  { %v2475_v16 = vld [vmem:[#allocation2 + $0x112] sm:$0xff]  ;;  %v849_v31 = vmul.f32 %v2361_v3, %v829_v21  ;;  %v956_v37 = vmul.f32 %v2391_v9, %v829_v21  ;;  %v1101_v50 = vmul.f32 %v2372_v7, %v973_v60 }
 0x124   :  { %v885_v32 = vmul.f32 %v2376_v24, %v2475_v16  ;;  %v1150_v35 = vadd.f32 %v993_v8, %v957_v6  ;;  %v992_v40 = vmul.f32 %v2395_v42, %v2475_v16  ;;  %v1133_v53 = vadd.f32 %v920_v38, %v884_v17 }
 0x125   :  { %v1118_v13 = vadd.f32 %v849_v31, %v813_v30  ;;  %v1165_v6 = vadd.f32 %v1065_v29, %v1029_v23  ;;  %v1064_v8 = vmul.f32 %v2353_v26, %v829_v21  ;;  %v1148_v31 = vadd.f32 %v991_v28, %v955_v27  ;;  %v789_v23 = vld [vmem:[#allocation2 + $0xd0] sm:$0xff]  ;;  %v2520_v27 = vld [vmem:[#allocation2 + $0xc2] sm:$0xff] }
 0x126   :  { %v1134_v19 = vadd.f32 %v921_v22, %v885_v32  ;;  %v1149_v52 = vadd.f32 %v992_v40, %v956_v37  ;;  %v1198_v48 = vadd.f32 %v1166_v49, %v1150_v35  ;;  %v1181_v30 = vadd.f32 %v1133_v53, %v1117_v25  ;;  %v825_v21 = vld [vmem:[#allocation2 + $0xd1] sm:$0xff] }
 0x127   :  { %v1164_v15 = vadd.f32 %v1064_v8, %v1028_v20  ;;  %v1063_v17 = vmul.f32 %v2353_v26, %v2382_v34  ;;  %v1131_v29 = vadd.f32 %v918_v5, %v882_v63  ;;  %v1147_v49 = vadd.f32 %v990_v0, %v954_v45  ;;  %v2502_v35 = vld [vmem:[#allocation2 + $0xd2] sm:$0xff] }
 0x128   :  { %v1182_v51 = vadd.f32 %v1134_v19, %v1118_v13  ;;  %v1197_v22 = vadd.f32 %v1165_v6, %v1149_v52  ;;  %v953_v38 = vmul.f32 %v2391_v9, %v2414_v14  ;;  %v1115_v34 = vadd.f32 %v846_v18, %v2443_v57  ;;  %v787_v6 = vld [vmem:[#allocation2 + $0xb0] sm:$0xff] }
 0x129   :  { %v809_v53 = vmul.f32 %v2357_v1, %v789_v23  ;;  %v845_v0 = vmul.f32 %v2361_v3, %v825_v21  ;;  %v989_v63 = vmul.f32 %v2395_v42, %v2416_v46  ;;  %v1180_v25 = vadd.f32 %v1132_v56, %v1116_v10  ;;  %v823_v8 = vld [vmem:[#allocation2 + $0xb1] sm:$0xff] }
 0x12a   :  { %v1214_v32 = vadd.f32 %v1198_v48, %v1182_v51  ;;  %v1213_v48 = vadd.f32 %v1197_v22, %v1181_v30  ;;  %v1196_v51 = vadd.f32 %v1164_v15, %v1148_v31  ;;  %v881_v61 = vmul.f32 %v2376_v24, %v2502_v35  ;;  %v859_v22 = vld [vmem:[#allocation2 + $0xb2] sm:$0xff] }
 0x12b   :  { %v1179_v57 = vadd.f32 %v1131_v29, %v1115_v34  ;;  %v916_v18 = vmul.f32 %v2386_v36, %v789_v23  ;;  %v952_v28 = vmul.f32 %v2391_v9, %v825_v21  ;;  %v988_v11 = vmul.f32 %v2395_v42, %v2502_v35 }
 0x12c   :  { %v1230_v52 = vadd.f32 %v1214_v32, %v2435_v54  ;;  %v1163_v54 = vadd.f32 %v1063_v17, %v1027_v47  ;;  %v1229_v12 = vadd.f32 %v1213_v48, %v1101_v50  ;;  %v1212_v5 = vadd.f32 %v1196_v51, %v1180_v25  ;;  %v2556_v51 = vld [vmem:[#allocation2 + $0x21] sm:$0xff]  ;;  %v785_v50 = vld [vmem:[#allocation2 + $0x70] sm:$0xff] }
 0x12d   :  { %v1162_v10 = vadd.f32 %v1062_v44, %v1026_v33  ;;  %v1146_v47 = vadd.f32 %v989_v63, %v953_v38  ;;  %v880_v56 = vmul.f32 %v2376_v24, %v2520_v27  ;;  %v1025_v37 = vmul.f32 %v2349_v4, %v2397_v41  ;;  %v2562_v25 = vld [vmem:[#allocation2 + $0x71] sm:$0xff] }
 0x12e   :  { %1585 = vmatpush3.xpose.msk.msra.mxu1 %vm494_vm1, %v1230_v52  ;;  %v1195_v60 = vadd.f32 %v1163_v54, %v1147_v49  ;;  %v915_v40 = vmul.f32 %v2386_v36, %v2399_v39  ;;  %v1100_v45 = vmul.f32 %v2372_v7, %v2475_v16  ;;  %v1114_v13 = vadd.f32 %v845_v0, %v809_v53  ;;  %v2564_v54 = vld [vmem:[#allocation2 + $0x72] sm:$0xff] }
 0x12f   :  { %1586 = vmatprep.subr.mxu1 %v2757_v55  ;;  %v1130_v19 = vadd.f32 %v2461_v59, %v881_v61  ;;  %v1061_v20 = vmul.f32 %v2353_v26, %v2414_v14  ;;  %v1129_v30 = vadd.f32 %v916_v18, %v880_v56  ;;  %v1145_v41 = vadd.f32 %v988_v11, %v952_v28  ;;  %v2568_v18 = vld [vmem:[#allocation2 + $0x40] sm:$0xff] }
 0x130   :  { %v951_v31 = vmul.f32 %v2391_v9, %v2401_v43  ;;  %v1024_v15 = vmul.f32 %v2349_v4, %v789_v23  ;;  %v1228_v32 = vadd.f32 %v1212_v5, %v1100_v45  ;;  %v1211_v16 = vadd.f32 %v1195_v60, %v1179_v57  ;;  %v929_v56 = vld [vmem:[#allocation2 + $0x81] sm:$0xff] }
 0x131   :  { %v1194_v17 = vadd.f32 %v1162_v10, %v1146_v47  ;;  %v1060_v59 = vmul.f32 %v2353_v26, %v825_v21  ;;  %v1113_v14 = vadd.f32 %v2451_v62, %v2447_v58  ;;  %v807_v29 = vmul.f32 %v2357_v1, %v787_v6  ;;  %v2554_v21 = vld [vmem:[#allocation2 + $0x20] sm:$0xff]  ;;  %v2759_v45 = vld [vmem:[#allocation6_spill] sm:$0xff] }
 0x132   :  { %1587 = vmatpush3.xpose.msk.msra.mxu1 %vm494_vm1, %v1229_v12  ;;  %v843_v49 = vmul.f32 %v2361_v3, %v823_v8  ;;  %v987_v38 = vmul.f32 %v2395_v42, %v2520_v27  ;;  %v1099_v23 = vmul.f32 %v2372_v7, %v2412_v2  ;;  %v1178_v33 = vadd.f32 %v1130_v19, %v1114_v13  ;;  %v2758_v12 = vld [vmem:[#allocation13_spill] sm:$0xff] }
 0x133   :  { %1588 = vmatprep.subr.mxu1 %v2757_v55  ;;  %v1161_v52 = vadd.f32 %v1061_v20, %v1025_v37  ;;  %v879_v48 = vmul.f32 %v2376_v24, %v859_v22  ;;  %v1177_v58 = vadd.f32 %v1129_v30, %v1113_v14  ;;  %v914_v62 = vmul.f32 %v2386_v36, %v787_v6  ;;  %v893_v47 = vld [vmem:[#allocation2 + $0x80] sm:$0xff] }
 0x134   :  { %v950_v44 = vmul.f32 %v2391_v9, %v823_v8  ;;  %v986_v34 = vmul.f32 %v2395_v42, %v859_v22  ;;  %v1227_v53 = vadd.f32 %v1211_v16, %v1099_v23  ;;  %v1210_v0 = vadd.f32 %v1194_v17, %v1178_v33  ;;  %v2583_v37 = vld [vmem:[#allocation2 + $0x82] sm:$0xff] }
 0x135   :  { %v1193_v2 = vadd.f32 %v1161_v52, %v1145_v41  ;;  %v1160_v63 = vadd.f32 %v1060_v59, %v1024_v15  ;;  %v1144_v61 = vadd.f32 %v987_v38, %v951_v31  ;;  %v1023_v57 = vmul.f32 %v2349_v4, %v2399_v39  ;;  %v784_v59 = vld [vmem:[#allocation2 + $0x60] sm:$0xff] }
 0x136   :  { %1589 = vmatpush3.xpose.msk.msra.mxu1 %vm494_vm1, %v1228_v32  ;;  %v2572_v28 = vmul.f32 %v2357_v1, %v2554_v21  ;;  %v2576_v11 = vmul.f32 %v2361_v3, %v2556_v51  ;;  %v1098_v5 = vmul.f32 %v2372_v7, %v2758_v12  ;;  %v1112_v60 = vadd.f32 %v843_v49, %v807_v29  ;;  %v820_v14 = vld [vmem:[#allocation2 + $0x61] sm:$0xff] }
 0x137   :  { %1590 = vmatprep.subr.mxu1 %v2757_v55  ;;  %v1128_v10 = vadd.f32 %v915_v40, %v879_v48  ;;  %v1059_v39 = vmul.f32 %v2353_v26, %v2401_v43  ;;  %v1127_v13 = vadd.f32 %v914_v62, %v2759_v45  ;;  %v805_v19 = vmul.f32 %v2357_v1, %v785_v50  ;;  %v2603_v29 = vld [vmem:[#allocation2 + $0x62] sm:$0xff]  ;;  %v2623_v45 = vld [vmem:[#allocation2 + $0x52] sm:$0xff] }
 0x138   :  { %v841_v20 = vmul.f32 %v2361_v3, %v2562_v25  ;;  %v877_v6 = vmul.f32 %v2376_v24, %v2564_v54  ;;  %v1226_v40 = vadd.f32 %v1210_v0, %v1098_v5  ;;  %v1209_v8 = vadd.f32 %v1193_v2, %v1177_v58  ;;  %v2760_v58 = vld [vmem:[#allocation8_spill] sm:$0xff]  ;;  %v783_v5 = vld [vmem:[#allocation2 + $0x50] sm:$0xff] }
 0x139   :  { %v1192_v30 = vadd.f32 %v1160_v63, %v1144_v61  ;;  %v1143_v43 = vadd.f32 %v986_v34, %v950_v44  ;;  %v913_v41 = vmul.f32 %v2386_v36, %v893_v47  ;;  %v949_v22 = vmul.f32 %v2391_v9, %v929_v56 }
 0x13a   :  { %1591 = vmatpush3.xpose.msk.msra.mxu1 %vm494_vm1, %v1227_v53  ;;  %v985_v31 = vmul.f32 %v2395_v42, %v2583_v37  ;;  %v2598_v15 = vmul.f32 %v2357_v1, %v2568_v18  ;;  %v1097_v32 = vmul.f32 %v2372_v7, %v2416_v46  ;;  %v1176_v16 = vadd.f32 %v1128_v10, %v1112_v60  ;;  %v819_v60 = vld [vmem:[#allocation2 + $0x51] sm:$0xff] }
 0x13b   :  { %1592 = vmatprep.subr.mxu1 %v2757_v55  ;;  %v1159_v17 = vadd.f32 %v1059_v39, %v1023_v57  ;;  %v912_v49 = vmul.f32 %v2386_v36, %v785_v50  ;;  %v1110_v38 = vadd.f32 %v841_v20, %v805_v19  ;;  %v1126_v23 = vadd.f32 %v913_v41, %v877_v6 }
 0x13c   :  { %v948_v33 = vmul.f32 %v2391_v9, %v2562_v25  ;;  %v984_v52 = vmul.f32 %v2395_v42, %v2564_v54  ;;  %v1225_v48 = vadd.f32 %v1209_v8, %v1097_v32  ;;  %v1208_v46 = vadd.f32 %v1192_v30, %v1176_v16  ;;  %v2639_v32 = vld [vmem:[#allocation2 + $0x42] sm:$0xff] }
 0x13d   :  { %v1175_v62 = vadd.f32 %v1127_v13, %v2760_v58  ;;  %v1191_v44 = vadd.f32 %v1159_v17, %v1143_v43  ;;  %v804_v34 = vmul.f32 %v2357_v1, %v784_v59  ;;  %v840_v53 = vmul.f32 %v2361_v3, %v820_v14 }
 0x13e   :  { %1593 = vmatpush3.xpose.msk.msra.mxu1 %vm494_vm1, %v1226_v40  ;;  %v876_v0 = vmul.f32 %v2376_v24, %v2603_v29  ;;  %v911_v2 = vmul.f32 %v2386_v36, %v784_v59  ;;  %v1096_v63 = vmul.f32 %v2372_v7, %v2502_v35  ;;  %v1142_v61 = vadd.f32 %v985_v31, %v949_v22 }
 0x13f   :  { %1594 = vmatprep.subr.mxu1 %v2757_v55  ;;  %v1021_v57 = vmul.f32 %v2349_v4, %v893_v47  ;;  %v1057_v12 = vmul.f32 %v2353_v26, %v929_v56  ;;  %v1141_v39 = vadd.f32 %v984_v52, %v948_v33  ;;  %v947_v13 = vmul.f32 %v2391_v9, %v820_v14 }
 0x140   :  { %v1125_v10 = vadd.f32 %v912_v49, %v876_v0  ;;  %v1020_v19 = vmul.f32 %v2349_v4, %v785_v50  ;;  %v1224_v20 = vadd.f32 %v1208_v46, %v1096_v63  ;;  %v1207_v6 = vadd.f32 %v1191_v44, %v1175_v62  ;;  %v2761_v50 = vld [vmem:[#allocation7_spill] sm:$0xff] }
 0x141   :  { %v1174_v35 = vadd.f32 %v1126_v23, %v1110_v38  ;;  %v1056_v47 = vmul.f32 %v2353_v26, %v2562_v25  ;;  %v1109_v40 = vadd.f32 %v840_v53, %v804_v34  ;;  %v803_v56 = vmul.f32 %v2357_v1, %v783_v5  ;;  %v818_v25 = vld [vmem:[#allocation2 + $0x41] sm:$0xff]  ;;  %v781_v63 = vld [vmem:[#allocation2 + $0x30] sm:$0xff] }
 0x142   :  { %1595 = vmatpush3.xpose.msk.msra.mxu1 %vm494_vm1, %v1225_v48  ;;  %v839_v8 = vmul.f32 %v2361_v3, %v819_v60  ;;  %v983_v30 = vmul.f32 %v2395_v42, %v2603_v29  ;;  %v1095_v43 = vmul.f32 %v2372_v7, %v2520_v27  ;;  %v1190_v41 = vadd.f32 %v2761_v50, %v1142_v61  ;;  %v817_v61 = vld [vmem:[#allocation2 + $0x31] sm:$0xff] }
 0x143   :  { %1596 = vmatprep.subr.mxu1 %v2757_v55  ;;  %v1157_v22 = vadd.f32 %v1057_v12, %v1021_v57  ;;  %v875_v31 = vmul.f32 %v2376_v24, %v2623_v45  ;;  %v1173_v16 = vadd.f32 %v1125_v10, %v1109_v40  ;;  %v910_v17 = vmul.f32 %v2386_v36, %v783_v5  ;;  %v2655_v10 = vld [vmem:[#allocation2 + $0x32] sm:$0xff] }
 0x144   :  { %v946_v49 = vmul.f32 %v2391_v9, %v819_v60  ;;  %v982_v38 = vmul.f32 %v2395_v42, %v2623_v45  ;;  %v1223_v27 = vadd.f32 %v1207_v6, %v1095_v43  ;;  %v1206_v23 = vadd.f32 %v1190_v41, %v1174_v35 }
 0x145   :  { %v1189_v33 = vadd.f32 %v1157_v22, %v1141_v39  ;;  %v1156_v52 = vadd.f32 %v1056_v47, %v1020_v19  ;;  %v838_v48 = vmul.f32 %v2361_v3, %v818_v25  ;;  %v874_v46 = vmul.f32 %v2376_v24, %v2639_v32  ;;  %v2762_v19 = vld [vmem:[#allocation9_spill] sm:$0xff] }
 0x146   :  { %1597 = vmatpush3.xpose.msk.msra.mxu1 %vm494_vm1, %v1224_v20  ;;  %v1019_v58 = vmul.f32 %v2349_v4, %v784_v59  ;;  %v909_v62 = vmul.f32 %v2386_v36, %v2568_v18  ;;  %v1108_v44 = vadd.f32 %v839_v8, %v803_v56  ;;  %v1124_v34 = vadd.f32 %v911_v2, %v875_v31 }
 0x147   :  { %1598 = vmatprep.subr.mxu1 %v2757_v55  ;;  %v1140_v53 = vadd.f32 %v983_v30, %v947_v13  ;;  %v1055_v0 = vmul.f32 %v2353_v26, %v820_v14  ;;  %v1123_v57 = vadd.f32 %v910_v17, %v874_v46  ;;  %v1139_v12 = vadd.f32 %v982_v38, %v946_v49  ;;  %v779_v46 = vld [vmem:[#allocation2 + $0x10] sm:$0xff] }
 0x148   :  { %v945_v59 = vmul.f32 %v2391_v9, %v818_v25  ;;  %v1018_v39 = vmul.f32 %v2349_v4, %v783_v5  ;;  %v1222_v20 = vadd.f32 %v1206_v23, %v2762_v19  ;;  %v1205_v6 = vadd.f32 %v1189_v33, %v1173_v16 }
 0x149   :  { %v1188_v35 = vadd.f32 %v1156_v52, %v1140_v53  ;;  %v1054_v2 = vmul.f32 %v2353_v26, %v819_v60  ;;  %v1107_v14 = vadd.f32 %v838_v48, %v2598_v15  ;;  %v801_v13 = vmul.f32 %v2357_v1, %v781_v63  ;;  %v2671_v60 = vld [vmem:[#allocation2 + $0x22] sm:$0xff]  ;;  %v851_v53 = vld [vmem:[#allocation2 + $0x12] sm:$0xff] }
 0x14a   :  { %1599 = vmatpush3.xpose.msk.msra.mxu1 %vm494_vm1, %v1223_v27  ;;  %v837_v47 = vmul.f32 %v2361_v3, %v817_v61  ;;  %v981_v40 = vmul.f32 %v2395_v42, %v2639_v32  ;;  %v1093_v5 = vmul.f32 %v2372_v7, %v2583_v37  ;;  %v1172_v56 = vadd.f32 %v1124_v34, %v1108_v44 }
 0x14b   :  { %1600 = vmatprep.subr.mxu1 %v2757_v55  ;;  %v1155_v8 = vadd.f32 %v1055_v0, %v1019_v58  ;;  %v873_v30 = vmul.f32 %v2376_v24, %v2655_v10  ;;  %v1171_v15 = vadd.f32 %v1123_v57, %v1107_v14  ;;  %v908_v43 = vmul.f32 %v2386_v36, %v781_v63  ;;  %v815_v58 = vld [vmem:[#allocation2 + $0x11] sm:$0xff] }
 0x14c   :  { %v944_v50 = vmul.f32 %v2391_v9, %v817_v61  ;;  %v980_v41 = vmul.f32 %v2395_v42, %v2655_v10  ;;  %v1221_v22 = vadd.f32 %v1205_v6, %v1093_v5  ;;  %v1204_v31 = vadd.f32 %v1188_v35, %v1172_v56 }
 0x14d   :  { %v1187_v37 = vadd.f32 %v1155_v8, %v1139_v12  ;;  %v1154_v16 = vadd.f32 %v1054_v2, %v1018_v39  ;;  %v1138_v17 = vadd.f32 %v981_v40, %v945_v59  ;;  %v872_v49 = vmul.f32 %v2376_v24, %v2671_v60  ;;  %v2765_v8 = vld [vmem:[#allocation12_spill] sm:$0xff] }
 0x14e   :  { %1601 = vmatpush3.xpose.msk.msra.mxu1 %vm494_vm1, %v1222_v20  ;;  %v1017_v38 = vmul.f32 %v2349_v4, %v2568_v18  ;;  %v907_v27 = vmul.f32 %v2386_v36, %v2554_v21  ;;  %v1092_v23 = vmul.f32 %v2372_v7, %v2564_v54  ;;  %v1106_v33 = vadd.f32 %v837_v47, %v801_v13 }
 0x14f   :  { %1602 = vmatprep.subr.mxu1 %v2757_v55  ;;  %v1122_v52 = vadd.f32 %v909_v62, %v873_v30  ;;  %v1053_v48 = vmul.f32 %v2353_v26, %v818_v25  ;;  %v1121_v44 = vadd.f32 %v908_v43, %v872_v49  ;;  %v1137_v34 = vadd.f32 %v980_v41, %v944_v50 }
 0x150   :  { %v943_v18 = vmul.f32 %v2391_v9, %v2556_v51  ;;  %v1016_v0 = vmul.f32 %v2349_v4, %v781_v63  ;;  %v1220_v57 = vadd.f32 %v1204_v31, %v1092_v23  ;;  %v1203_v12 = vadd.f32 %v1187_v37, %v1171_v15 }
 0x151   :  { %v1186_v59 = vadd.f32 %v1154_v16, %v1138_v17  ;;  %v1052_v54 = vmul.f32 %v2353_v26, %v817_v61  ;;  %v1105_v25 = vadd.f32 %v2576_v11, %v2572_v28  ;;  %v799_v62 = vmul.f32 %v2357_v1, %v779_v46 }
 0x152   :  { %1603 = vmatpush3.xpose.msk.msra.mxu1 %vm494_vm1, %v1221_v22  ;;  %v835_v39 = vmul.f32 %v2361_v3, %v815_v58  ;;  %v979_v19 = vmul.f32 %v2395_v42, %v2671_v60  ;;  %v1091_v63 = vmul.f32 %v2372_v7, %v2603_v29  ;;  %v1170_v20 = vadd.f32 %v1122_v52, %v1106_v33 }
 0x153   :  { %1604 = vmatprep.subr.mxu1 %v2757_v55  ;;  %v1153_v6 = vadd.f32 %v1053_v48, %v1017_v38  ;;  %v871_v35 = vmul.f32 %v2376_v24, %v851_v53  ;;  %v1169_v61 = vadd.f32 %v1121_v44, %v1105_v25  ;;  %v906_v28 = vmul.f32 %v2386_v36, %v779_v46  ;;  %v1231_v38 = vld [vmem:[%s2743_s5] sm:$0xff] }
 0x154   :  { %v942_v1 = vmul.f32 %v2391_v9, %v815_v58  ;;  %v978_v3 = vmul.f32 %v2395_v42, %v851_v53  ;;  %v1219_v11 = vadd.f32 %v1203_v12, %v1091_v63  ;;  %v1202_v2 = vadd.f32 %v1186_v59, %v1170_v20  ;;  %v2763_v9 = vld [vmem:[#allocation10_spill] sm:$0xff]  ;;  %v2764_v42 = vld [vmem:[#allocation11_spill] sm:$0xff] }
 0x155   :  { %v1185_v14 = vadd.f32 %v1153_v6, %v1137_v34  ;;  %v1152_v13 = vadd.f32 %v1052_v54, %v1016_v0  ;;  %v1136_v47 = vadd.f32 %v979_v19, %v943_v18  ;;  %v1015_v29 = vmul.f32 %v2349_v4, %v2554_v21 }
 0x156   :  { %1605 = vmatpush3.xpose.msk.msra.mxu1 %vm494_vm1, %v1220_v57  ;;  %v1090_v24 = vmul.f32 %v2372_v7, %v2623_v45  ;;  %v1104_v40 = vadd.f32 %v835_v39, %v799_v62  ;;  %v1120_v5 = vadd.f32 %v907_v27, %v871_v35  ;;  %v1051_v36 = vmul.f32 %v2353_v26, %v2556_v51 }
 0x157   :  { %1606 = vmatprep.subr.mxu1 %v2757_v55  ;;  %v1103_v56 = vadd.f32 %v2764_v42, %v2763_v9  ;;  %v1119_v30 = vadd.f32 %v906_v28, %v2765_v8  ;;  %v1201_v43 = vadd.f32 %v1185_v14, %v1169_v61  ;;  %v1184_v4 = vadd.f32 %v1152_v13, %v1136_v47 }
 0x158   :  { %v1218_v15 = vadd.f32 %v1202_v2, %v1090_v24  ;;  %v1135_v21 = vadd.f32 %v978_v3, %v942_v1  ;;  %v1089_v45 = vmul.f32 %v2372_v7, %v2639_v32  ;;  %v1168_v50 = vadd.f32 %v1120_v5, %v1104_v40 }
 0x159   :  { %v1151_v41 = vadd.f32 %v1051_v36, %v1015_v29  ;;  %v1167_v22 = vadd.f32 %v1119_v30, %v1103_v56  ;;  %v1088_v37 = vmul.f32 %v2372_v7, %v2655_v10  ;;  %v1087_v32 = vmul.f32 %v2372_v7, %v2671_v60  ;;  %v1236_v10 = vpop.permute.xlu0 %1235 }
 0x15a   :  { %1607 = vmatpush3.xpose.msk.msra.mxu1 %vm494_vm1, %v1219_v11  ;;  %v1217_v26 = vadd.f32 %v1201_v43, %v1089_v45  ;;  %v1200_v51 = vadd.f32 %v1184_v4, %v1168_v50 }
 0x15b   :  { %1608 = vmatprep.subr.mxu1 %v2757_v55  ;;  %v1183_v31 = vadd.f32 %v1151_v41, %v1135_v21 }
 0x15c   :  { %v1216_v16 = vadd.f32 %v1200_v51, %v1088_v37 }
 0x15d   :  { %v1199_v17 = vadd.f32 %v1183_v31, %v1167_v22 }
 0x15e   :  { %1609 = vmatpush3.xpose.msk.msra.mxu1 %vm494_vm1, %v1218_v15 }
 0x15f   :  { %1610 = vmatprep.subr.mxu1 %v2757_v55  ;;  %v1215_v49 = vadd.f32 %v1199_v17, %v1087_v32 }
 0x162   :  { %1611 = vmatpush3.xpose.msk.msra.mxu1 %vm494_vm1, %v1217_v26 }
 0x163   :  { %1612 = vmatprep.subr.mxu1 %v2757_v55 }
 0x166   :  { %1613 = vmatpush3.xpose.msk.msra.mxu1 %vm494_vm1, %v1216_v16 }
 0x167   :  { %1614 = vmatprep.subr.mxu1 %v2757_v55 }
 0x16a   :  { %1615 = vmatpush3.xpose.msk.msra.mxu1 %vm494_vm1, %v1215_v49 }
 0x16d   :  { %1617 = vmatmul.mubr.msk.f32.vlgmr.msra.gmra.mxu1 %vm494_vm1, %v1231_v38 }
 0x22d   :  { %v1355_v27 = vpop.f32.mrf.mxu1 }
 0x22e   :  { %v1356_v23 = vadd.f32 %v1355_v27, %v1236_v10 }
 0x22f   :  { %v1618_v33 = vpop.f32.mrf.mxu1 }
 0x230   :  { %v1359_v52 = vmax.f32 %v1356_v23, 0.0 }
 0x232   :  { %1360 = vst [vmem:[#allocation3] sm:$0xff] %v1359_v52 }
 0x233   :  { %1635 = shalt.err (!%p1632_p4)
}
 0x234   :  { %1370 = dma.vmem_to_hbm [thread:$0]  %s1368_s17, 128, %s2745_s7, [#allocation4]  }
 0x235   :  { %1644 = dma.done.wait [#allocation4], 128  }
 0x236   :  { %1645 = vsyncadd [#allocation4], 4294967168 }
 0x237   :  { %1374 = vsyncpa [#allocation4], 1 }

</bundles_post_ra>
